<compile_context>
chip_gen: v5e
topology: v5e:2x2
jax: 0.10.0
libtpu: 0.0.40
codegen_flags: <defaults>
</compile_context>

<pallas_src>
import functools

import jax
import jax.numpy as jnp
from jax.experimental import pallas as pl
from jax.experimental.pallas import tpu as pltpu


# ------------------------------------------------------------------ config
class Config:
    embed_dim = 32
    num_frames = 8
    n_text_samples = 7
    n_video_samples = 7
    alpha = 1e-1
    beta = 1e-4


_VMEM = pl.BlockSpec(memory_space=pltpu.MemorySpace.VMEM)


# ----------------------------------------------------------- fused kernel
def _fused_kernel(alpha, beta, data_ref, v_ref, wd_ref, wh_ref, out_ref):
    B = data_ref.shape[0]
    D = data_ref.shape[1] // 5
    BF = v_ref.shape[0]
    F = BF // B
    H = D // 2
    scale = 1.0 / float(D) ** 0.5
    neg = jnp.float32(-1e30)
    bf16 = jnp.bfloat16

    # ---- unpack the weight slabs (static slices of 128-lane-aligned blocks)
    def wd(i, ncols):
        return wd_ref[:, i * 128:i * 128 + ncols]          # bf16 [D, ncols]

    vt_wq, vt_wkv, vt_wo = wd(0, D), wd(1, 2 * D), wd(2, D)
    t_w1 = wd(3, H)                                        # concat-folded
    v_wq, v_wk = wd(4, D), wd(5, D)
    v_w1a, v_w1b = wd(6, H), wd(7, H)
    t_wms = wh_ref[0:H, 0:2 * D]
    v_wms = wh_ref[0:H, 128:128 + 2 * D]
    t_b1 = wh_ref[H:H + 1, 0:H].astype(jnp.float32)
    v_b1 = wh_ref[H + 1:H + 2, 0:H].astype(jnp.float32)

    # ---- unpack the data slab
    t = data_ref[:, 0:D]                                   # [B, D]
    et_m = data_ref[:, D:2 * D]                            # E[eps_t]
    et_s = data_ref[:, 2 * D:3 * D]                        # E[eps_t^2]
    ev_m = data_ref[:, 3 * D:4 * D]                        # E[eps_v]
    ev_s = data_ref[:, 4 * D:5 * D]                        # E[eps_v^2]
    v = v_ref[...]                                         # [B*F, D]

    # ---- helpers: single-pass bf16 MXU matmuls with f32 accumulation
    def mxu(a, b):
        return jnp.dot(a.astype(bf16), b.astype(bf16),
                       preferred_element_type=jnp.float32)

    def mxu_nt(a, b):    # a [M,K] contracted with b [N,K] -> [M,N]
        return jax.lax.dot_general(a.astype(bf16), b.astype(bf16),
                                   (((1,), (1,)), ((), ())),
                                   preferred_element_type=jnp.float32)

    def l2norm(x):
        return x * jax.lax.rsqrt(jnp.sum(x * x, axis=-1, keepdims=True) + 1e-12)

    def masked_softmax(s, mask):
        # NOTE: pl.reciprocal(approx=True) -> rows sum to 1 only to ~1e-3/1e-4
        # relative error (EUP approximate reciprocal); acceptable for training.
        s = jnp.where(mask, s, neg)
        s = s - jnp.max(s, axis=-1, keepdims=True)
        p = jnp.exp(s)
        return p * pl.reciprocal(jnp.sum(p, axis=-1, keepdims=True), approx=True)

    # block-diagonal mask: query b may only attend to its own F frames
    b_ids = jax.lax.broadcasted_iota(jnp.int32, (B, BF), 0)
    j_ids = jax.lax.broadcasted_iota(jnp.int32, (B, BF), 1)
    frame_mask = (j_ids >= b_ids * F) & (j_ids < (b_ids + 1) * F)

    # ---- video_transformer: sentence-conditioned attention pooling of frames
    q = mxu(t, vt_wq)                                      # [B, D]
    kv = mxu(v, vt_wkv)                                    # [BF, 2D]
    k, val = kv[:, :D], kv[:, D:]
    p = masked_softmax(mxu_nt(q, k) * scale, frame_mask)   # [B, BF]
    v_pooled = mxu(mxu(p, val), vt_wo)                     # [B, D]

    # ---- cosine similarity matrix
    tn = l2norm(t)
    vpn = l2norm(v_pooled)
    sim = mxu_nt(tn, vpn)                                  # [B, B]

    # ---- probabilistic text head (LFA context == feature -> concat folded)
    h_t = jax.nn.gelu(mxu(tn, t_w1) + t_b1, approximate=True)       # [B, H]
    ms_t = mxu(h_t, t_wms)                                 # [B, 2D]
    mu_t = tn + ms_t[:, :D]
    log_sig_t = jnp.clip(ms_t[:, D:], -8.0, 8.0)           # clamp: avoid exp overflow
    sigma_t = jnp.exp(log_sig_t)

    # ---- probabilistic video head (LFA over own normalized frames + PER)
    vn = l2norm(v)                                         # [BF, D]
    qv = mxu(vpn, v_wq)                                    # [B, D]
    kvv = mxu(vn, v_wk)                                    # [BF, D]
    pv = masked_softmax(mxu_nt(qv, kvv) * scale, frame_mask)
    agg_v = mxu(pv, vn)                                    # [B, D]
    h_v = jax.nn.gelu(mxu(vpn, v_w1a) + mxu(agg_v, v_w1b) + v_b1,
                      approximate=True)                    # [B, H]
    ms_v = mxu(h_v, v_wms)                                 # [B, 2D]
    mu_v = vpn + ms_v[:, :D]
    log_sig_v = jnp.clip(ms_v[:, D:], -8.0, 8.0)
    sigma_v = jnp.exp(log_sig_v)

    # ---- Gaussian sampling statistics, folded analytically over eps moments
    # (mean pairwise squared distance over all N_t x N_v sample pairs only needs
    #  per-batch sample means and mean squared norms).
    t_mean = mu_t + sigma_t * et_m                         # [B, D]
    v_mean = mu_v + sigma_v * ev_m
    t_sq = jnp.sum(mu_t * mu_t + 2.0 * mu_t * sigma_t * et_m
                   + sigma_t * sigma_t * et_s, axis=-1, keepdims=True)  # [B, 1]
    v_sq = jnp.sum(mu_v * mu_v + 2.0 * mu_v * sigma_v * ev_m
                   + sigma_v * sigma_v * ev_s, axis=-1, keepdims=True)
    dis = t_sq + v_sq.T - 2.0 * mxu_nt(t_mean, v_mean)     # [B, B]

    # ---- loss epilogue
    eye = (jax.lax.broadcasted_iota(jnp.int32, (B, B), 0)
           == jax.lax.broadcasted_iota(jnp.int32, (B, B), 1)).astype(jnp.float32)

    def sum_all(x):                                        # full reduce -> (1, 1)
        return jnp.sum(jnp.sum(x, axis=-1, keepdims=True), axis=0, keepdims=True)

    def contrastive(logits):                               # symmetric InfoNCE
        m_r = jnp.max(logits, axis=-1, keepdims=True)
        lsm_r = logits - (m_r + jnp.log(jnp.sum(jnp.exp(logits - m_r),
                                                axis=-1, keepdims=True)))
        m_c = jnp.max(logits, axis=0, keepdims=True)
        lsm_c = logits - (m_c + jnp.log(jnp.sum(jnp.exp(logits - m_c),
                                                axis=0, keepdims=True)))
        return (-0.5 / B) * (sum_all(lsm_r * eye) + sum_all(lsm_c * eye))

    intra_sim_loss = contrastive(sim)
    inter_dis_loss = contrastive(-dis)

    # diagonal-Gaussian KL(N_v || N_t) using distribution means mu_t / mu_v
    var_t = sigma_t * sigma_t
    var_v = sigma_v * sigma_v
    kl = (log_sig_t - log_sig_v
          + (var_v + (mu_v - mu_t) ** 2) / (2.0 * var_t) - 0.5)
    kl_loss = sum_all(kl) * (1.0 / B)

    loss = alpha * (intra_sim_loss + inter_dis_loss) + beta * kl_loss   # [1, 1]

    # ---- single lane-dense output slab:
    #   lanes [0:B) = sim, [B:2B) = dis, lane 2B = loss (broadcast to all rows)
    out_rows, out_cols = out_ref.shape
    pieces = [sim, dis, jnp.broadcast_to(loss, (B, 1))]
    lane_pad = out_cols - 2 * B - 1
    if lane_pad > 0:
        pieces.append(jnp.zeros((B, lane_pad), jnp.float32))
    row = jnp.concatenate(pieces, axis=-1)                 # [B, out_cols]
    if out_rows > B:
        row = jnp.concatenate(
            [row, jnp.zeros((out_rows - B, out_cols), jnp.float32)], axis=0)
    out_ref[...] = row


# ------------------------------------------------- parameter init + packing
def init_params(config, key):
    """Returns the two pre-packed bf16 weight slabs consumed by the kernel."""
    D = config.embed_dim
    H = D // 2
    ks = jax.random.split(key, 9)

    def w(k, shape):
        return (0.02 * jax.random.normal(k, shape)).astype(jnp.float32)

    vt_wq, vt_wkv, vt_wo = w(ks[0], (D, D)), w(ks[1], (D, 2 * D)), w(ks[2], (D, D))
    t_w1 = w(ks[3], (2 * D, H))                  # [feat ‖ ctx] -> H
    t_b1 = jnp.zeros((1, H), jnp.float32)
    t_wms = w(ks[4], (H, 2 * D))
    v_wq, v_wk = w(ks[5], (D, D)), w(ks[6], (D, D))
    v_w1 = w(ks[7], (2 * D, H))
    v_b1 = jnp.zeros((1, H), jnp.float32)
    v_wms = w(ks[8], (H, 2 * D))

    # text head: context token == feature, so concat([x, x]) @ W1 == x @ (W1a + W1b)
    t_w1_folded = t_w1[:D] + t_w1[D:]
    # video head: concat([vpn, agg]) @ W1 == vpn @ W1a + agg @ W1b
    v_w1a, v_w1b = v_w1[:D], v_w1[D:]

    def blk(m):                                  # pad each matrix to a 128-lane block
        return jnp.pad(m, ((0, 0), (0, 128 - m.shape[1])))

    # slab 1: everything with D input rows, one 128-lane block per matrix
    w_d = jnp.concatenate(
        [blk(vt_wq), blk(vt_wkv), blk(vt_wo), blk(t_w1_folded),
         blk(v_wq), blk(v_wk), blk(v_w1a), blk(v_w1b)], axis=-1
    ).astype(jnp.bfloat16)                       # [D, 8*128]

    # slab 2: rows 0:H = [t_wms | v_wms], row H = t_b1, row H+1 = v_b1
    bias_rows = jnp.zeros((2, 256), jnp.float32)
    bias_rows = bias_rows.at[0, :H].set(t_b1[0])
    bias_rows = bias_rows.at[1, :H].set(v_b1[0])
    w_h = jnp.concatenate(
        [jnp.concatenate([blk(t_wms), blk(v_wms)], axis=-1), bias_rows], axis=0
    ).astype(jnp.bfloat16)                       # [H+2, 256]

    return {"w_d": w_d, "w_h": w_h}


# --------------------------------------------------------------- the model
@functools.partial(jax.jit, static_argnums=(4,))
def clip_stochastic_forward(packed, t_feat, v_feat, eps, config):
    """Training-branch forward: returns (sim_matrix, dis_matrix, loss)."""
    eps_text, eps_video = eps
    B, F, D = v_feat.shape
    H = D // 2
    BF = B * F
    assert 2 * B + 1 <= 128, "output-slab packing assumes B <= 63"

    # wrapper-side layout plumbing (kept out of the kernel): flatten frames and
    # reduce eps to the per-sample first/second moments the kernel consumes.
    v_flat = v_feat.reshape(BF, D)
    et_m = jnp.mean(eps_text, axis=1)
    et_s = jnp.mean(eps_text * eps_text, axis=1)
    ev_m = jnp.mean(eps_video, axis=1)
    ev_s = jnp.mean(eps_video * eps_video, axis=1)
    data = jnp.concatenate([t_feat, et_m, et_s, ev_m, ev_s], axis=-1)   # [B, 5D]

    out_rows = max(8, ((B + 7) // 8) * 8)
    out_cols = 128
    w_d, w_h = packed["w_d"], packed["w_h"]

    # advisory cost estimate for XLA scheduling around this tiny custom call
    mxu_flops = 2 * (B * D * D + BF * D * 2 * D + 2 * B * BF * D + B * D * D
                     + B * B * D + B * D * H + B * H * 2 * D
                     + B * D * D + BF * D * D + 2 * B * BF * D
                     + 2 * B * D * H + B * H * 2 * D + B * B * D)
    transcendentals = 2 * B * BF + 8 * B * H + 8 * B * D + 8 * B * B
    bytes_accessed = ((data.size + v_flat.size) * 4
                      + (w_d.size + w_h.size) * 2
                      + out_rows * out_cols * 4)

    kernel = functools.partial(_fused_kernel, float(config.alpha), float(config.beta))
    out = pl.pallas_call(
        kernel,
        out_shape=jax.ShapeDtypeStruct((out_rows, out_cols), jnp.float32),
        in_specs=[_VMEM, _VMEM, _VMEM, _VMEM],
        out_specs=_VMEM,
        cost_estimate=pl.CostEstimate(flops=mxu_flops,
                                      transcendentals=transcendentals,
                                      bytes_accessed=bytes_accessed),
    )(data, v_flat, w_d, w_h)

    sim_matrix = out[:B, :B]
    dis_matrix = out[:B, B:2 * B]
    loss = out[0, 2 * B]
    return sim_matrix, dis_matrix, loss


# ------------------------------------------------------------------ main
if __name__ == "__main__":
    cfg = Config()
    B, F, D = 4, cfg.num_frames, cfg.embed_dim

    key = jax.random.PRNGKey(0)
    k_param, k_t, k_v, k_et, k_ev = jax.random.split(key, 5)

    packed = init_params(cfg, k_param)

    # Synthetic CLIP backbone outputs (see TODO(synk) at top of file).
    t_feat = jax.random.normal(k_t, (B, D), dtype=jnp.float32)
    v_feat = jax.random.normal(k_v, (B, F, D), dtype=jnp.float32)

    eps_text = jax.random.normal(k_et, (B, cfg.n_text_samples, D), dtype=jnp.float32)
    eps_video = jax.random.normal(k_ev, (B, cfg.n_video_samples, D), dtype=jnp.float32)

    sim_matrix, dis_matrix, loss = clip_stochastic_forward(
        packed, t_feat, v_feat, (eps_text, eps_video), cfg)
    jax.block_until_ready((sim_matrix, dis_matrix, loss))

    assert sim_matrix.shape == (B, B)
    assert dis_matrix.shape == (B, B)
    assert loss.shape == ()
    assert bool(jnp.isfinite(loss))
    assert bool(jnp.all(jnp.isfinite(sim_matrix)))
    assert bool(jnp.all(jnp.isfinite(dis_matrix)))
    print("KERNEL_OK")
</pallas_src>

<mosaic_0001>
module attributes {stable_mosaic.version = 11 : i64} {
  func.func @_fused_kernel(%arg0: memref<4x160xf32, #tpu.memory_space<vmem>>, %arg1: memref<32x32xf32, #tpu.memory_space<vmem>>, %arg2: memref<32x1024xbf16, #tpu.memory_space<vmem>>, %arg3: memref<18x256xbf16, #tpu.memory_space<vmem>>, %arg4: memref<8x128xf32, #tpu.memory_space<vmem>>) attributes {dimension_semantics = [], scalar_prefetch = 0 : i64, scratch_operands = 0 : i64, tpu.core_type = #tpu.core_type<tc>} {
    %c0 = arith.constant 0 : index
    %c0_0 = arith.constant 0 : index
    %0 = vector.load %arg2[%c0, %c0_0] : memref<32x1024xbf16, #tpu.memory_space<vmem>>, vector<32x32xbf16>
    %c0_1 = arith.constant 0 : index
    %c128 = arith.constant 128 : index
    %1 = vector.load %arg2[%c0_1, %c128] : memref<32x1024xbf16, #tpu.memory_space<vmem>>, vector<32x64xbf16>
    %c0_2 = arith.constant 0 : index
    %c256 = arith.constant 256 : index
    %2 = vector.load %arg2[%c0_2, %c256] : memref<32x1024xbf16, #tpu.memory_space<vmem>>, vector<32x32xbf16>
    %c0_3 = arith.constant 0 : index
    %c384 = arith.constant 384 : index
    %3 = vector.load %arg2[%c0_3, %c384] : memref<32x1024xbf16, #tpu.memory_space<vmem>>, vector<32x16xbf16>
    %c0_4 = arith.constant 0 : index
    %c512 = arith.constant 512 : index
    %4 = vector.load %arg2[%c0_4, %c512] : memref<32x1024xbf16, #tpu.memory_space<vmem>>, vector<32x32xbf16>
    %c0_5 = arith.constant 0 : index
    %c640 = arith.constant 640 : index
    %5 = vector.load %arg2[%c0_5, %c640] : memref<32x1024xbf16, #tpu.memory_space<vmem>>, vector<32x32xbf16>
    %c0_6 = arith.constant 0 : index
    %c768 = arith.constant 768 : index
    %6 = vector.load %arg2[%c0_6, %c768] : memref<32x1024xbf16, #tpu.memory_space<vmem>>, vector<32x16xbf16>
    %c0_7 = arith.constant 0 : index
    %c896 = arith.constant 896 : index
    %7 = vector.load %arg2[%c0_7, %c896] : memref<32x1024xbf16, #tpu.memory_space<vmem>>, vector<32x16xbf16>
    %c0_8 = arith.constant 0 : index
    %c0_9 = arith.constant 0 : index
    %8 = vector.load %arg3[%c0_8, %c0_9] : memref<18x256xbf16, #tpu.memory_space<vmem>>, vector<16x64xbf16>
    %c0_10 = arith.constant 0 : index
    %c128_11 = arith.constant 128 : index
    %9 = vector.load %arg3[%c0_10, %c128_11] : memref<18x256xbf16, #tpu.memory_space<vmem>>, vector<16x64xbf16>
    %c16 = arith.constant 16 : index
    %c0_12 = arith.constant 0 : index
    %10 = vector.load %arg3[%c16, %c0_12] : memref<18x256xbf16, #tpu.memory_space<vmem>>, vector<1x16xbf16>
    %11 = arith.extf %10 : vector<1x16xbf16> to vector<1x16xf32>
    %c17 = arith.constant 17 : index
    %c0_13 = arith.constant 0 : index
    %12 = vector.load %arg3[%c17, %c0_13] : memref<18x256xbf16, #tpu.memory_space<vmem>>, vector<1x16xbf16>
    %13 = arith.extf %12 : vector<1x16xbf16> to vector<1x16xf32>
    %c0_14 = arith.constant 0 : index
    %c0_15 = arith.constant 0 : index
    %14 = vector.load %arg0[%c0_14, %c0_15] : memref<4x160xf32, #tpu.memory_space<vmem>>, vector<4x32xf32>
    %c0_16 = arith.constant 0 : index
    %c32 = arith.constant 32 : index
    %15 = vector.load %arg0[%c0_16, %c32] : memref<4x160xf32, #tpu.memory_space<vmem>>, vector<4x32xf32>
    %c0_17 = arith.constant 0 : index
    %c64 = arith.constant 64 : index
    %16 = vector.load %arg0[%c0_17, %c64] : memref<4x160xf32, #tpu.memory_space<vmem>>, vector<4x32xf32>
    %c0_18 = arith.constant 0 : index
    %c96 = arith.constant 96 : index
    %17 = vector.load %arg0[%c0_18, %c96] : memref<4x160xf32, #tpu.memory_space<vmem>>, vector<4x32xf32>
    %c0_19 = arith.constant 0 : index
    %c128_20 = arith.constant 128 : index
    %18 = vector.load %arg0[%c0_19, %c128_20] : memref<4x160xf32, #tpu.memory_space<vmem>>, vector<4x32xf32>
    %c0_21 = arith.constant 0 : index
    %c0_22 = arith.constant 0 : index
    %19 = vector.load %arg1[%c0_21, %c0_22] : memref<32x32xf32, #tpu.memory_space<vmem>>, vector<32x32xf32>
    %20 = tpu.iota {dimensions = array<i32: 0>} : vector<4x32xi32>
    %21 = tpu.iota {dimensions = array<i32: 1>} : vector<4x32xi32>
    %c8_i32 = arith.constant 8 : i32
    %22 = vector.broadcast %c8_i32 : i32 to vector<4x32xi32>
    %23 = arith.muli %20, %22 : vector<4x32xi32>
    %24 = arith.cmpi sge, %21, %23 : vector<4x32xi32>
    %c1_i32 = arith.constant 1 : i32
    %25 = vector.broadcast %c1_i32 : i32 to vector<4x32xi32>
    %26 = arith.addi %20, %25 : vector<4x32xi32>
    %c8_i32_23 = arith.constant 8 : i32
    %27 = vector.broadcast %c8_i32_23 : i32 to vector<4x32xi32>
    %28 = arith.muli %26, %27 : vector<4x32xi32>
    %29 = arith.cmpi slt, %21, %28 : vector<4x32xi32>
    %30 = arith.andi %24, %29 : vector<4x32xi1>
    %31 = arith.truncf %14 : vector<4x32xf32> to vector<4x32xbf16>
    %cst = arith.constant dense<0.000000e+00> : vector<4x32xf32>
    %32 = tpu.matmul %31, %0, %cst {dimension_numbers = #tpu.dot_dimension_numbers<[1], [0], [0], [1], [0, 0, 1, 1], [], []>} : vector<4x32xbf16>, vector<32x32xbf16>, vector<4x32xf32> -> vector<4x32xf32>
    %33 = arith.truncf %19 : vector<32x32xf32> to vector<32x32xbf16>
    %cst_24 = arith.constant dense<0.000000e+00> : vector<32x64xf32>
    %34 = tpu.matmul %33, %1, %cst_24 {dimension_numbers = #tpu.dot_dimension_numbers<[1], [0], [0], [1], [0, 0, 1, 1], [], []>} : vector<32x32xbf16>, vector<32x64xbf16>, vector<32x64xf32> -> vector<32x64xf32>
    %35 = vector.extract_strided_slice %34 {offsets = [0, 0], sizes = [32, 32], strides = [1, 1]} : vector<32x64xf32> to vector<32x32xf32>
    %36 = vector.extract_strided_slice %34 {offsets = [0, 32], sizes = [32, 32], strides = [1, 1]} : vector<32x64xf32> to vector<32x32xf32>
    %37 = arith.truncf %32 : vector<4x32xf32> to vector<4x32xbf16>
    %38 = arith.truncf %35 : vector<32x32xf32> to vector<32x32xbf16>
    %cst_25 = arith.constant dense<0.000000e+00> : vector<4x32xf32>
    %39 = tpu.matmul %37, %38, %cst_25 {dimension_numbers = #tpu.dot_dimension_numbers<[1], [1], [0], [0], [0, 0, 1, 0], [], []>} : vector<4x32xbf16>, vector<32x32xbf16>, vector<4x32xf32> -> vector<4x32xf32>
    %cst_26 = arith.constant 0.176776692 : f32
    %40 = vector.broadcast %cst_26 : f32 to vector<4x32xf32>
    %41 = arith.mulf %39, %40 : vector<4x32xf32>
    %cst_27 = arith.constant -1.000000e+30 : f32
    %42 = vector.broadcast %cst_27 : f32 to vector<4x32xf32>
    %43 = arith.select %30, %41, %42 : vector<4x32xi1>, vector<4x32xf32>
    %cst_28 = arith.constant dense<0xFF800000> : vector<4xf32>
    %44 = vector.multi_reduction <maximumf>, %43, %cst_28 [1] : vector<4x32xf32> to vector<4xf32>
    %45 = vector.shape_cast %44 : vector<4xf32> to vector<4x1xf32>
    %46 = vector.broadcast %45 : vector<4x1xf32> to vector<4x32xf32>
    %47 = arith.subf %43, %46 : vector<4x32xf32>
    %48 = math.exp %47 : vector<4x32xf32>
    %cst_29 = arith.constant dense<0.000000e+00> : vector<4xf32>
    %49 = vector.multi_reduction <add>, %48, %cst_29 [1] : vector<4x32xf32> to vector<4xf32>
    %50 = vector.shape_cast %49 : vector<4xf32> to vector<4x1xf32>
    %51 = tpu.reciprocal %50 {approx = true} : vector<4x1xf32> -> vector<4x1xf32>
    %52 = vector.broadcast %51 : vector<4x1xf32> to vector<4x32xf32>
    %53 = arith.mulf %48, %52 : vector<4x32xf32>
    %54 = arith.truncf %53 : vector<4x32xf32> to vector<4x32xbf16>
    %55 = arith.truncf %36 : vector<32x32xf32> to vector<32x32xbf16>
    %cst_30 = arith.constant dense<0.000000e+00> : vector<4x32xf32>
    %56 = tpu.matmul %54, %55, %cst_30 {dimension_numbers = #tpu.dot_dimension_numbers<[1], [0], [0], [1], [0, 0, 1, 1], [], []>} : vector<4x32xbf16>, vector<32x32xbf16>, vector<4x32xf32> -> vector<4x32xf32>
    %57 = arith.truncf %56 : vector<4x32xf32> to vector<4x32xbf16>
    %cst_31 = arith.constant dense<0.000000e+00> : vector<4x32xf32>
    %58 = tpu.matmul %57, %2, %cst_31 {dimension_numbers = #tpu.dot_dimension_numbers<[1], [0], [0], [1], [0, 0, 1, 1], [], []>} : vector<4x32xbf16>, vector<32x32xbf16>, vector<4x32xf32> -> vector<4x32xf32>
    %59 = arith.mulf %14, %14 : vector<4x32xf32>
    %cst_32 = arith.constant dense<0.000000e+00> : vector<4xf32>
    %60 = vector.multi_reduction <add>, %59, %cst_32 [1] : vector<4x32xf32> to vector<4xf32>
    %61 = vector.shape_cast %60 : vector<4xf32> to vector<4x1xf32>
    %cst_33 = arith.constant 9.99999996E-13 : f32
    %62 = vector.broadcast %cst_33 : f32 to vector<4x1xf32>
    %63 = arith.addf %61, %62 : vector<4x1xf32>
    %64 = math.rsqrt %63 : vector<4x1xf32>
    %65 = vector.broadcast %64 : vector<4x1xf32> to vector<4x32xf32>
    %66 = arith.mulf %14, %65 : vector<4x32xf32>
    %67 = arith.mulf %58, %58 : vector<4x32xf32>
    %cst_34 = arith.constant dense<0.000000e+00> : vector<4xf32>
    %68 = vector.multi_reduction <add>, %67, %cst_34 [1] : vector<4x32xf32> to vector<4xf32>
    %69 = vector.shape_cast %68 : vector<4xf32> to vector<4x1xf32>
    %cst_35 = arith.constant 9.99999996E-13 : f32
    %70 = vector.broadcast %cst_35 : f32 to vector<4x1xf32>
    %71 = arith.addf %69, %70 : vector<4x1xf32>
    %72 = math.rsqrt %71 : vector<4x1xf32>
    %73 = vector.broadcast %72 : vector<4x1xf32> to vector<4x32xf32>
    %74 = arith.mulf %58, %73 : vector<4x32xf32>
    %75 = arith.truncf %66 : vector<4x32xf32> to vector<4x32xbf16>
    %76 = arith.truncf %74 : vector<4x32xf32> to vector<4x32xbf16>
    %cst_36 = arith.constant dense<0.000000e+00> : vector<4x4xf32>
    %77 = tpu.matmul %75, %76, %cst_36 {dimension_numbers = #tpu.dot_dimension_numbers<[1], [1], [0], [0], [0, 0, 1, 0], [], []>} : vector<4x32xbf16>, vector<4x32xbf16>, vector<4x4xf32> -> vector<4x4xf32>
    %78 = arith.truncf %66 : vector<4x32xf32> to vector<4x32xbf16>
    %cst_37 = arith.constant dense<0.000000e+00> : vector<4x16xf32>
    %79 = tpu.matmul %78, %3, %cst_37 {dimension_numbers = #tpu.dot_dimension_numbers<[1], [0], [0], [1], [0, 0, 1, 1], [], []>} : vector<4x32xbf16>, vector<32x16xbf16>, vector<4x16xf32> -> vector<4x16xf32>
    %80 = vector.broadcast %11 : vector<1x16xf32> to vector<4x16xf32>
    %81 = arith.addf %79, %80 : vector<4x16xf32>
    %82 = arith.mulf %81, %81 : vector<4x16xf32>
    %83 = arith.mulf %81, %82 : vector<4x16xf32>
    %cst_38 = arith.constant 4.471500e-02 : f32
    %84 = vector.broadcast %cst_38 : f32 to vector<4x16xf32>
    %85 = arith.mulf %84, %83 : vector<4x16xf32>
    %86 = arith.addf %81, %85 : vector<4x16xf32>
    %cst_39 = arith.constant 0.797884583 : f32
    %87 = vector.broadcast %cst_39 : f32 to vector<4x16xf32>
    %88 = arith.mulf %87, %86 : vector<4x16xf32>
    %89 = math.tanh %88 : vector<4x16xf32>
    %cst_40 = arith.constant 1.000000e+00 : f32
    %90 = vector.broadcast %cst_40 : f32 to vector<4x16xf32>
    %91 = arith.addf %90, %89 : vector<4x16xf32>
    %cst_41 = arith.constant 5.000000e-01 : f32
    %92 = vector.broadcast %cst_41 : f32 to vector<4x16xf32>
    %93 = arith.mulf %92, %91 : vector<4x16xf32>
    %94 = arith.mulf %81, %93 : vector<4x16xf32>
    %95 = arith.truncf %94 : vector<4x16xf32> to vector<4x16xbf16>
    %cst_42 = arith.constant dense<0.000000e+00> : vector<4x64xf32>
    %96 = tpu.matmul %95, %8, %cst_42 {dimension_numbers = #tpu.dot_dimension_numbers<[1], [0], [0], [1], [0, 0, 1, 1], [], []>} : vector<4x16xbf16>, vector<16x64xbf16>, vector<4x64xf32> -> vector<4x64xf32>
    %97 = vector.extract_strided_slice %96 {offsets = [0, 0], sizes = [4, 32], strides = [1, 1]} : vector<4x64xf32> to vector<4x32xf32>
    %98 = arith.addf %66, %97 : vector<4x32xf32>
    %99 = vector.extract_strided_slice %96 {offsets = [0, 32], sizes = [4, 32], strides = [1, 1]} : vector<4x64xf32> to vector<4x32xf32>
    %cst_43 = arith.constant -8.000000e+00 : f32
    %cst_44 = arith.constant 8.000000e+00 : f32
    %100 = vector.broadcast %cst_43 : f32 to vector<4x32xf32>
    %101 = arith.maximumf %100, %99 : vector<4x32xf32>
    %102 = vector.broadcast %cst_44 : f32 to vector<4x32xf32>
    %103 = arith.minimumf %102, %101 : vector<4x32xf32>
    %104 = math.exp %103 : vector<4x32xf32>
    %105 = arith.mulf %19, %19 : vector<32x32xf32>
    %cst_45 = arith.constant dense<0.000000e+00> : vector<32xf32>
    %106 = vector.multi_reduction <add>, %105, %cst_45 [1] : vector<32x32xf32> to vector<32xf32>
    %107 = vector.shape_cast %106 : vector<32xf32> to vector<32x1xf32>
    %cst_46 = arith.constant 9.99999996E-13 : f32
    %108 = vector.broadcast %cst_46 : f32 to vector<32x1xf32>
    %109 = arith.addf %107, %108 : vector<32x1xf32>
    %110 = math.rsqrt %109 : vector<32x1xf32>
    %111 = vector.broadcast %110 : vector<32x1xf32> to vector<32x32xf32>
    %112 = arith.mulf %19, %111 : vector<32x32xf32>
    %113 = arith.truncf %74 : vector<4x32xf32> to vector<4x32xbf16>
    %cst_47 = arith.constant dense<0.000000e+00> : vector<4x32xf32>
    %114 = tpu.matmul %113, %4, %cst_47 {dimension_numbers = #tpu.dot_dimension_numbers<[1], [0], [0], [1], [0, 0, 1, 1], [], []>} : vector<4x32xbf16>, vector<32x32xbf16>, vector<4x32xf32> -> vector<4x32xf32>
    %115 = arith.truncf %112 : vector<32x32xf32> to vector<32x32xbf16>
    %cst_48 = arith.constant dense<0.000000e+00> : vector<32x32xf32>
    %116 = tpu.matmul %115, %5, %cst_48 {dimension_numbers = #tpu.dot_dimension_numbers<[1], [0], [0], [1], [0, 0, 1, 1], [], []>} : vector<32x32xbf16>, vector<32x32xbf16>, vector<32x32xf32> -> vector<32x32xf32>
    %117 = arith.truncf %114 : vector<4x32xf32> to vector<4x32xbf16>
    %118 = arith.truncf %116 : vector<32x32xf32> to vector<32x32xbf16>
    %cst_49 = arith.constant dense<0.000000e+00> : vector<4x32xf32>
    %119 = tpu.matmul %117, %118, %cst_49 {dimension_numbers = #tpu.dot_dimension_numbers<[1], [1], [0], [0], [0, 0, 1, 0], [], []>} : vector<4x32xbf16>, vector<32x32xbf16>, vector<4x32xf32> -> vector<4x32xf32>
    %cst_50 = arith.constant 0.176776692 : f32
    %120 = vector.broadcast %cst_50 : f32 to vector<4x32xf32>
    %121 = arith.mulf %119, %120 : vector<4x32xf32>
    %cst_51 = arith.constant -1.000000e+30 : f32
    %122 = vector.broadcast %cst_51 : f32 to vector<4x32xf32>
    %123 = arith.select %30, %121, %122 : vector<4x32xi1>, vector<4x32xf32>
    %cst_52 = arith.constant dense<0xFF800000> : vector<4xf32>
    %124 = vector.multi_reduction <maximumf>, %123, %cst_52 [1] : vector<4x32xf32> to vector<4xf32>
    %125 = vector.shape_cast %124 : vector<4xf32> to vector<4x1xf32>
    %126 = vector.broadcast %125 : vector<4x1xf32> to vector<4x32xf32>
    %127 = arith.subf %123, %126 : vector<4x32xf32>
    %128 = math.exp %127 : vector<4x32xf32>
    %cst_53 = arith.constant dense<0.000000e+00> : vector<4xf32>
    %129 = vector.multi_reduction <add>, %128, %cst_53 [1] : vector<4x32xf32> to vector<4xf32>
    %130 = vector.shape_cast %129 : vector<4xf32> to vector<4x1xf32>
    %131 = tpu.reciprocal %130 {approx = true} : vector<4x1xf32> -> vector<4x1xf32>
    %132 = vector.broadcast %131 : vector<4x1xf32> to vector<4x32xf32>
    %133 = arith.mulf %128, %132 : vector<4x32xf32>
    %134 = arith.truncf %133 : vector<4x32xf32> to vector<4x32xbf16>
    %135 = arith.truncf %112 : vector<32x32xf32> to vector<32x32xbf16>
    %cst_54 = arith.constant dense<0.000000e+00> : vector<4x32xf32>
    %136 = tpu.matmul %134, %135, %cst_54 {dimension_numbers = #tpu.dot_dimension_numbers<[1], [0], [0], [1], [0, 0, 1, 1], [], []>} : vector<4x32xbf16>, vector<32x32xbf16>, vector<4x32xf32> -> vector<4x32xf32>
    %137 = arith.truncf %74 : vector<4x32xf32> to vector<4x32xbf16>
    %cst_55 = arith.constant dense<0.000000e+00> : vector<4x16xf32>
    %138 = tpu.matmul %137, %6, %cst_55 {dimension_numbers = #tpu.dot_dimension_numbers<[1], [0], [0], [1], [0, 0, 1, 1], [], []>} : vector<4x32xbf16>, vector<32x16xbf16>, vector<4x16xf32> -> vector<4x16xf32>
    %139 = arith.truncf %136 : vector<4x32xf32> to vector<4x32xbf16>
    %cst_56 = arith.constant dense<0.000000e+00> : vector<4x16xf32>
    %140 = tpu.matmul %139, %7, %cst_56 {dimension_numbers = #tpu.dot_dimension_numbers<[1], [0], [0], [1], [0, 0, 1, 1], [], []>} : vector<4x32xbf16>, vector<32x16xbf16>, vector<4x16xf32> -> vector<4x16xf32>
    %141 = arith.addf %138, %140 : vector<4x16xf32>
    %142 = vector.broadcast %13 : vector<1x16xf32> to vector<4x16xf32>
    %143 = arith.addf %141, %142 : vector<4x16xf32>
    %144 = arith.mulf %143, %143 : vector<4x16xf32>
    %145 = arith.mulf %143, %144 : vector<4x16xf32>
    %cst_57 = arith.constant 4.471500e-02 : f32
    %146 = vector.broadcast %cst_57 : f32 to vector<4x16xf32>
    %147 = arith.mulf %146, %145 : vector<4x16xf32>
    %148 = arith.addf %143, %147 : vector<4x16xf32>
    %cst_58 = arith.constant 0.797884583 : f32
    %149 = vector.broadcast %cst_58 : f32 to vector<4x16xf32>
    %150 = arith.mulf %149, %148 : vector<4x16xf32>
    %151 = math.tanh %150 : vector<4x16xf32>
    %cst_59 = arith.constant 1.000000e+00 : f32
    %152 = vector.broadcast %cst_59 : f32 to vector<4x16xf32>
    %153 = arith.addf %152, %151 : vector<4x16xf32>
    %cst_60 = arith.constant 5.000000e-01 : f32
    %154 = vector.broadcast %cst_60 : f32 to vector<4x16xf32>
    %155 = arith.mulf %154, %153 : vector<4x16xf32>
    %156 = arith.mulf %143, %155 : vector<4x16xf32>
    %157 = arith.truncf %156 : vector<4x16xf32> to vector<4x16xbf16>
    %cst_61 = arith.constant dense<0.000000e+00> : vector<4x64xf32>
    %158 = tpu.matmul %157, %9, %cst_61 {dimension_numbers = #tpu.dot_dimension_numbers<[1], [0], [0], [1], [0, 0, 1, 1], [], []>} : vector<4x16xbf16>, vector<16x64xbf16>, vector<4x64xf32> -> vector<4x64xf32>
    %159 = vector.extract_strided_slice %158 {offsets = [0, 0], sizes = [4, 32], strides = [1, 1]} : vector<4x64xf32> to vector<4x32xf32>
    %160 = arith.addf %74, %159 : vector<4x32xf32>
    %161 = vector.extract_strided_slice %158 {offsets = [0, 32], sizes = [4, 32], strides = [1, 1]} : vector<4x64xf32> to vector<4x32xf32>
    %cst_62 = arith.constant -8.000000e+00 : f32
    %cst_63 = arith.constant 8.000000e+00 : f32
    %162 = vector.broadcast %cst_62 : f32 to vector<4x32xf32>
    %163 = arith.maximumf %162, %161 : vector<4x32xf32>
    %164 = vector.broadcast %cst_63 : f32 to vector<4x32xf32>
    %165 = arith.minimumf %164, %163 : vector<4x32xf32>
    %166 = math.exp %165 : vector<4x32xf32>
    %167 = arith.mulf %104, %15 : vector<4x32xf32>
    %168 = arith.addf %98, %167 : vector<4x32xf32>
    %169 = arith.mulf %166, %17 : vector<4x32xf32>
    %170 = arith.addf %160, %169 : vector<4x32xf32>
    %171 = arith.mulf %98, %98 : vector<4x32xf32>
    %cst_64 = arith.constant 2.000000e+00 : f32
    %172 = vector.broadcast %cst_64 : f32 to vector<4x32xf32>
    %173 = arith.mulf %172, %98 : vector<4x32xf32>
    %174 = arith.mulf %173, %104 : vector<4x32xf32>
    %175 = arith.mulf %174, %15 : vector<4x32xf32>
    %176 = arith.addf %171, %175 : vector<4x32xf32>
    %177 = arith.mulf %104, %104 : vector<4x32xf32>
    %178 = arith.mulf %177, %16 : vector<4x32xf32>
    %179 = arith.addf %176, %178 : vector<4x32xf32>
    %cst_65 = arith.constant dense<0.000000e+00> : vector<4xf32>
    %180 = vector.multi_reduction <add>, %179, %cst_65 [1] : vector<4x32xf32> to vector<4xf32>
    %181 = vector.shape_cast %180 : vector<4xf32> to vector<4x1xf32>
    %182 = arith.mulf %160, %160 : vector<4x32xf32>
    %cst_66 = arith.constant 2.000000e+00 : f32
    %183 = vector.broadcast %cst_66 : f32 to vector<4x32xf32>
    %184 = arith.mulf %183, %160 : vector<4x32xf32>
    %185 = arith.mulf %184, %166 : vector<4x32xf32>
    %186 = arith.mulf %185, %17 : vector<4x32xf32>
    %187 = arith.addf %182, %186 : vector<4x32xf32>
    %188 = arith.mulf %166, %166 : vector<4x32xf32>
    %189 = arith.mulf %188, %18 : vector<4x32xf32>
    %190 = arith.addf %187, %189 : vector<4x32xf32>
    %cst_67 = arith.constant dense<0.000000e+00> : vector<4xf32>
    %191 = vector.multi_reduction <add>, %190, %cst_67 [1] : vector<4x32xf32> to vector<4xf32>
    %192 = vector.shape_cast %191 : vector<4xf32> to vector<4x1xf32>
    %193 = tpu.transpose %192, [1, 0] : vector<4x1xf32> -> vector<1x4xf32>
    %194 = vector.broadcast %181 : vector<4x1xf32> to vector<4x4xf32>
    %195 = vector.broadcast %193 : vector<1x4xf32> to vector<4x4xf32>
    %196 = arith.addf %194, %195 : vector<4x4xf32>
    %197 = arith.truncf %168 : vector<4x32xf32> to vector<4x32xbf16>
    %198 = arith.truncf %170 : vector<4x32xf32> to vector<4x32xbf16>
    %cst_68 = arith.constant dense<0.000000e+00> : vector<4x4xf32>
    %199 = tpu.matmul %197, %198, %cst_68 {dimension_numbers = #tpu.dot_dimension_numbers<[1], [1], [0], [0], [0, 0, 1, 0], [], []>} : vector<4x32xbf16>, vector<4x32xbf16>, vector<4x4xf32> -> vector<4x4xf32>
    %cst_69 = arith.constant 2.000000e+00 : f32
    %200 = vector.broadcast %cst_69 : f32 to vector<4x4xf32>
    %201 = arith.mulf %200, %199 : vector<4x4xf32>
    %202 = arith.subf %196, %201 : vector<4x4xf32>
    %203 = tpu.iota {dimensions = array<i32: 0>} : vector<4x4xi32>
    %204 = tpu.iota {dimensions = array<i32: 1>} : vector<4x4xi32>
    %205 = arith.cmpi eq, %203, %204 : vector<4x4xi32>
    %206 = arith.extui %205 : vector<4x4xi1> to vector<4x4xi32>
    %207 = arith.sitofp %206 : vector<4x4xi32> to vector<4x4xf32>
    %cst_70 = arith.constant dense<0xFF800000> : vector<4xf32>
    %208 = vector.multi_reduction <maximumf>, %77, %cst_70 [1] : vector<4x4xf32> to vector<4xf32>
    %209 = vector.shape_cast %208 : vector<4xf32> to vector<4x1xf32>
    %210 = vector.broadcast %209 : vector<4x1xf32> to vector<4x4xf32>
    %211 = arith.subf %77, %210 : vector<4x4xf32>
    %212 = math.exp %211 : vector<4x4xf32>
    %cst_71 = arith.constant dense<0.000000e+00> : vector<4xf32>
    %213 = vector.multi_reduction <add>, %212, %cst_71 [1] : vector<4x4xf32> to vector<4xf32>
    %214 = vector.shape_cast %213 : vector<4xf32> to vector<4x1xf32>
    %215 = math.log %214 : vector<4x1xf32>
    %216 = arith.addf %209, %215 : vector<4x1xf32>
    %217 = vector.broadcast %216 : vector<4x1xf32> to vector<4x4xf32>
    %218 = arith.subf %77, %217 : vector<4x4xf32>
    %cst_72 = arith.constant dense<0xFF800000> : vector<4xf32>
    %219 = vector.multi_reduction <maximumf>, %77, %cst_72 [0] : vector<4x4xf32> to vector<4xf32>
    %220 = vector.shape_cast %219 : vector<4xf32> to vector<1x4xf32>
    %221 = vector.broadcast %220 : vector<1x4xf32> to vector<4x4xf32>
    %222 = arith.subf %77, %221 : vector<4x4xf32>
    %223 = math.exp %222 : vector<4x4xf32>
    %cst_73 = arith.constant dense<0.000000e+00> : vector<4xf32>
    %224 = vector.multi_reduction <add>, %223, %cst_73 [0] : vector<4x4xf32> to vector<4xf32>
    %225 = vector.shape_cast %224 : vector<4xf32> to vector<1x4xf32>
    %226 = math.log %225 : vector<1x4xf32>
    %227 = arith.addf %220, %226 : vector<1x4xf32>
    %228 = vector.broadcast %227 : vector<1x4xf32> to vector<4x4xf32>
    %229 = arith.subf %77, %228 : vector<4x4xf32>
    %230 = arith.mulf %218, %207 : vector<4x4xf32>
    %cst_74 = arith.constant dense<0.000000e+00> : vector<4xf32>
    %231 = vector.multi_reduction <add>, %230, %cst_74 [1] : vector<4x4xf32> to vector<4xf32>
    %232 = vector.shape_cast %231 : vector<4xf32> to vector<4x1xf32>
    %cst_75 = arith.constant dense<0.000000e+00> : vector<1xf32>
    %233 = vector.multi_reduction <add>, %232, %cst_75 [0] : vector<4x1xf32> to vector<1xf32>
    %234 = vector.shape_cast %233 : vector<1xf32> to vector<1x1xf32>
    %235 = arith.mulf %229, %207 : vector<4x4xf32>
    %cst_76 = arith.constant dense<0.000000e+00> : vector<4xf32>
    %236 = vector.multi_reduction <add>, %235, %cst_76 [1] : vector<4x4xf32> to vector<4xf32>
    %237 = vector.shape_cast %236 : vector<4xf32> to vector<4x1xf32>
    %cst_77 = arith.constant dense<0.000000e+00> : vector<1xf32>
    %238 = vector.multi_reduction <add>, %237, %cst_77 [0] : vector<4x1xf32> to vector<1xf32>
    %239 = vector.shape_cast %238 : vector<1xf32> to vector<1x1xf32>
    %240 = arith.addf %234, %239 : vector<1x1xf32>
    %cst_78 = arith.constant -1.250000e-01 : f32
    %241 = vector.broadcast %cst_78 : f32 to vector<1x1xf32>
    %242 = arith.mulf %241, %240 : vector<1x1xf32>
    %cst_79 = arith.constant 0.000000e+00 : f32
    %243 = vector.broadcast %cst_79 : f32 to vector<4x4xf32>
    %244 = arith.subf %243, %202 : vector<4x4xf32>
    %cst_80 = arith.constant dense<0xFF800000> : vector<4xf32>
    %245 = vector.multi_reduction <maximumf>, %244, %cst_80 [1] : vector<4x4xf32> to vector<4xf32>
    %246 = vector.shape_cast %245 : vector<4xf32> to vector<4x1xf32>
    %247 = vector.broadcast %246 : vector<4x1xf32> to vector<4x4xf32>
    %248 = arith.subf %244, %247 : vector<4x4xf32>
    %249 = math.exp %248 : vector<4x4xf32>
    %cst_81 = arith.constant dense<0.000000e+00> : vector<4xf32>
    %250 = vector.multi_reduction <add>, %249, %cst_81 [1] : vector<4x4xf32> to vector<4xf32>
    %251 = vector.shape_cast %250 : vector<4xf32> to vector<4x1xf32>
    %252 = math.log %251 : vector<4x1xf32>
    %253 = arith.addf %246, %252 : vector<4x1xf32>
    %254 = vector.broadcast %253 : vector<4x1xf32> to vector<4x4xf32>
    %255 = arith.subf %244, %254 : vector<4x4xf32>
    %cst_82 = arith.constant dense<0xFF800000> : vector<4xf32>
    %256 = vector.multi_reduction <maximumf>, %244, %cst_82 [0] : vector<4x4xf32> to vector<4xf32>
    %257 = vector.shape_cast %256 : vector<4xf32> to vector<1x4xf32>
    %258 = vector.broadcast %257 : vector<1x4xf32> to vector<4x4xf32>
    %259 = arith.subf %244, %258 : vector<4x4xf32>
    %260 = math.exp %259 : vector<4x4xf32>
    %cst_83 = arith.constant dense<0.000000e+00> : vector<4xf32>
    %261 = vector.multi_reduction <add>, %260, %cst_83 [0] : vector<4x4xf32> to vector<4xf32>
    %262 = vector.shape_cast %261 : vector<4xf32> to vector<1x4xf32>
    %263 = math.log %262 : vector<1x4xf32>
    %264 = arith.addf %257, %263 : vector<1x4xf32>
    %265 = vector.broadcast %264 : vector<1x4xf32> to vector<4x4xf32>
    %266 = arith.subf %244, %265 : vector<4x4xf32>
    %267 = arith.mulf %255, %207 : vector<4x4xf32>
    %cst_84 = arith.constant dense<0.000000e+00> : vector<4xf32>
    %268 = vector.multi_reduction <add>, %267, %cst_84 [1] : vector<4x4xf32> to vector<4xf32>
    %269 = vector.shape_cast %268 : vector<4xf32> to vector<4x1xf32>
    %cst_85 = arith.constant dense<0.000000e+00> : vector<1xf32>
    %270 = vector.multi_reduction <add>, %269, %cst_85 [0] : vector<4x1xf32> to vector<1xf32>
    %271 = vector.shape_cast %270 : vector<1xf32> to vector<1x1xf32>
    %272 = arith.mulf %266, %207 : vector<4x4xf32>
    %cst_86 = arith.constant dense<0.000000e+00> : vector<4xf32>
    %273 = vector.multi_reduction <add>, %272, %cst_86 [1] : vector<4x4xf32> to vector<4xf32>
    %274 = vector.shape_cast %273 : vector<4xf32> to vector<4x1xf32>
    %cst_87 = arith.constant dense<0.000000e+00> : vector<1xf32>
    %275 = vector.multi_reduction <add>, %274, %cst_87 [0] : vector<4x1xf32> to vector<1xf32>
    %276 = vector.shape_cast %275 : vector<1xf32> to vector<1x1xf32>
    %277 = arith.addf %271, %276 : vector<1x1xf32>
    %cst_88 = arith.constant -1.250000e-01 : f32
    %278 = vector.broadcast %cst_88 : f32 to vector<1x1xf32>
    %279 = arith.mulf %278, %277 : vector<1x1xf32>
    %280 = arith.mulf %104, %104 : vector<4x32xf32>
    %281 = arith.mulf %166, %166 : vector<4x32xf32>
    %282 = arith.subf %103, %165 : vector<4x32xf32>
    %283 = arith.subf %160, %98 : vector<4x32xf32>
    %284 = arith.mulf %283, %283 : vector<4x32xf32>
    %285 = arith.addf %281, %284 : vector<4x32xf32>
    %cst_89 = arith.constant 2.000000e+00 : f32
    %286 = vector.broadcast %cst_89 : f32 to vector<4x32xf32>
    %287 = arith.mulf %286, %280 : vector<4x32xf32>
    %288 = arith.divf %285, %287 : vector<4x32xf32>
    %289 = arith.addf %282, %288 : vector<4x32xf32>
    %cst_90 = arith.constant 5.000000e-01 : f32
    %290 = vector.broadcast %cst_90 : f32 to vector<4x32xf32>
    %291 = arith.subf %289, %290 : vector<4x32xf32>
    %cst_91 = arith.constant dense<0.000000e+00> : vector<4xf32>
    %292 = vector.multi_reduction <add>, %291, %cst_91 [1] : vector<4x32xf32> to vector<4xf32>
    %293 = vector.shape_cast %292 : vector<4xf32> to vector<4x1xf32>
    %cst_92 = arith.constant dense<0.000000e+00> : vector<1xf32>
    %294 = vector.multi_reduction <add>, %293, %cst_92 [0] : vector<4x1xf32> to vector<1xf32>
    %295 = vector.shape_cast %294 : vector<1xf32> to vector<1x1xf32>
    %cst_93 = arith.constant 2.500000e-01 : f32
    %296 = vector.broadcast %cst_93 : f32 to vector<1x1xf32>
    %297 = arith.mulf %295, %296 : vector<1x1xf32>
    %298 = arith.addf %242, %279 : vector<1x1xf32>
    %cst_94 = arith.constant 1.000000e-01 : f32
    %299 = vector.broadcast %cst_94 : f32 to vector<1x1xf32>
    %300 = arith.mulf %299, %298 : vector<1x1xf32>
    %cst_95 = arith.constant 9.99999974E-5 : f32
    %301 = vector.broadcast %cst_95 : f32 to vector<1x1xf32>
    %302 = arith.mulf %301, %297 : vector<1x1xf32>
    %303 = arith.addf %300, %302 : vector<1x1xf32>
    %304 = vector.shape_cast %303 : vector<1x1xf32> to vector<1x1xf32>
    %305 = vector.broadcast %304 : vector<1x1xf32> to vector<4x1xf32>
    %cst_96 = arith.constant 0.000000e+00 : f32
    %306 = vector.broadcast %cst_96 : f32 to vector<4x119xf32>
    %307 = tpu.concatenate %77, %202, %305, %306 in 1 : vector<4x4xf32>, vector<4x4xf32>, vector<4x1xf32>, vector<4x119xf32> -> vector<4x128xf32>
    %cst_97 = arith.constant 0.000000e+00 : f32
    %308 = vector.broadcast %cst_97 : f32 to vector<4x128xf32>
    %309 = tpu.concatenate %307, %308 in 0 : vector<4x128xf32>, vector<4x128xf32> -> vector<8x128xf32>
    %c0_98 = arith.constant 0 : index
    %c0_99 = arith.constant 0 : index
    %310 = vector.load %arg4[%c0_98, %c0_99] : memref<8x128xf32, #tpu.memory_space<vmem>>, vector<8x128xf32>
    tpu.vector_store %arg4[%c0_98, %c0_99], %309 {strides = array<i32>} : memref<8x128xf32, #tpu.memory_space<vmem>>, vector<8x128xf32>,
    return
  }
}

</mosaic_0001>

<bundles_post_ra>
// kernel: clip_stochastic_forward.1
= control target key start
LH: loop header
LB: loop body
LE: loop exit
PB: predicated region body
PF: predicated region fallthrough
CT: control target
= control target key end

     0   :  { %9 = vsyncpa [#allocation3], 0  ;;  %s1610_s0 = inlined_call_operand.vmem [shape: f32[4,160], index: 0, kind: input, shape index: {}]   ;;  %s1611_s1 = inlined_call_operand.hbm [shape: f32[32,32], index: 1, kind: input, shape index: {}]   ;;  %s1612_s2 = inlined_call_operand.vmem [shape: bf16[32,1024], index: 2, kind: input, shape index: {}]   ;;  %s1613_s3 = inlined_call_operand.hbm [shape: bf16[18,256], index: 3, kind: input, shape index: {}]   ;;  %s1614_s4 = inlined_call_operand.vmem [shape: f32[8,128], index: 4, kind: output, shape index: {}]  }
   0x1   :  { %s17_s17 = sshll.u32 %s1611_s1, 4  ;;  %s18_s17 = int_to_ptr.hbm [resolvable:$true] %s17_s17 }
   0x2   :  { %10 = vsyncpa [#allocation5], 0  ;;  %s1193_s18 = smov [#allocation2]   ;;  %s32_s22 = sshll.u32 %s1613_s3, 4  ;;  %s33_s22 = int_to_ptr.hbm [resolvable:$true] %s32_s22 }
   0x3   :  { %s19_s19 = sshll.u32 %s1193_s18, 4  ;;  %s1194_s23 = smov 128   ;;  %s20_s19 = int_to_ptr.vmem [resolvable:$true] %s19_s19 }
   0x4   :  { %s1195_s24 = smov 8   ;;  %s1196_s25 = smov [#allocation4]  }
   0x5   :  { %25 = dma.hbm_to_vmem [thread:$0]  %s18_s17, 512, %s20_s19, [#allocation3], %s1194_s23, %s1194_s23, %s1195_s24  }
   0x6   :  { %s34_s26 = sshll.u32 %s1196_s25, 4  ;;  %s35_s26 = int_to_ptr.vmem [resolvable:$true] %s34_s26 }
   0x7   :  { %40 = dma.hbm_to_vmem [thread:$0]  %s33_s22, 384, %s35_s26, [#allocation5], %s1194_s23, %s1194_s23, %s1195_s24  }
   0x8   :  { %1189 = dma.done.wait [#allocation3], 512  }
   0x9   :  { %1190 = vsyncadd [#allocation3], 4294966784 }
   0xa   :  { %1191 = dma.done.wait [#allocation5], 384  }
   0xb   :  { %1192 = vsyncadd [#allocation5], 4294966912  ;;  %v989_v0 = vld [vmem:[%s1612_s2 + $0x44] sm:$0xf]  ;;  %v1245_v5 = vld [vmem:[#allocation2] sm:$0xff]  ;;  %vm117_vm0 = vcmask 261120   ;;  %v94_v33 = vlaneseq }
   0xc   :  { %v1071_v1 = vld [vmem:[%s1612_s2 + $0x60] sm:$0xf0]  ;;  %v1247_v6 = vld [vmem:[#allocation2 + $0x8] sm:$0xff]  ;;  %v980_v7 = vld [vmem:[%s1612_s2 + $0x40] sm:$0xf]  ;;  %s1197_s17 = smov 96  }
   0xd   :  { %v985_v2 = vld [vmem:[%s1612_s2 + $0x4] sm:$0xf]  ;;  %v990_v3 = vor.u32 %v1071_v1, %v989_v0  ;;  %v1069_v9 = vld [vmem:[%s1612_s2 + $0x5c] sm:$0xf0]  ;;  %v134_v14 = vpack.c.bf16 %v1247_v6, %v1245_v5  ;;  %v1273_v17 = vld [vmem:[#allocation2 + $0x10] sm:$0xff]  ;;  %v1285_v34 = vshrl.u32 %v94_v33, 7  ;;  %v383_v0 = vmul.f32 %v1245_v5, %v1245_v5 }
   0xe   :  { %v1070_v4 = vld [vmem:[%s1612_s2 + $0x20] sm:$0xf0]  ;;  %v976_v10 = vld [vmem:[%s1612_s2] sm:$0xf]  ;;  %v981_v12 = vor.u32 %v1069_v9, %v980_v7  ;;  %v1288_v36 = vand.u32 127, %v94_v33  ;;  %vm200_vm4 = vcmask 257024  }
   0xf   :  { %160 = vmatpush.bf16.msra.mxu1 %v990_v3  ;;  %v986_v8 = vor.u32 %v1070_v4, %v985_v2  ;;  %v1068_v11 = vld [vmem:[%s1612_s2 + $0x1c] sm:$0xf0]  ;;  %v100_v35 = vadd.s32 1, %v1285_v34  ;;  %v98_v37 = vmul.u32 8, %v1285_v34  ;;  %v1001_v51 = vld [vmem:[%s1612_s2 + $0x48] sm:$0xf]  ;;  %v384_v2 = vmul.f32 %v1247_v6, %v1247_v6 }
  0x10   :  { %v1264_v13 = vld [vmem:[%s1610_s0] sm:$0xf]  ;;  %127 = vmatpush.bf16.msra.mxu0 %v981_v12  ;;  %v977_v15 = vor.u32 %v1068_v11, %v976_v10  ;;  %v1073_v52 = vld [vmem:[%s1612_s2 + $0x64] sm:$0xf0]  ;;  %v387_v1 = vsel %vm117_vm0, %v383_v0, 0.0  ;;  %s1198_s5 = smov 64  }
  0x11   :  { %666 = vst [vmem:[#allocation1] ss:$2 sm:$0xff] %v1264_v13  ;;  %v104_v16 = vpack.c.bf16 %v1264_v13, %v1264_v13  ;;  %v1275_v18 = vld [vmem:[#allocation2 + $0x18] sm:$0xff]  ;;  %v101_v38 = vmul.u32 8, %v100_v35  ;;  %vm1292_vm1 = vcmp.ge.s32.totalorder %v1288_v36, %v98_v37  ;;  %v1002_v53 = vor.u32 %v1073_v52, %v1001_v51  ;;  %v997_v58 = vld [vmem:[%s1612_s2 + $0x8] sm:$0xf] }
  0x12   :  { %v135_v19 = vpack.c.bf16 %v1275_v18, %v1273_v17  ;;  %v1072_v59 = vld [vmem:[%s1612_s2 + $0x24] sm:$0xf0]  ;;  %v386_v3 = vmul.f32 %v1275_v18, %v1275_v18  ;;  %v390_v4 = vsel %vm117_vm0, %v384_v2, 0.0  ;;  %v266_v11 = vmul.f32 %v1264_v13, %v1264_v13  ;;  %s1199_s13 = smov 32  }
  0x13   :  { %161 = vmatpush.bf16.msra.mxu1 %v986_v8  ;;  %vm1297_vm2 = vcmp.lt.s32.totalorder %v1288_v36, %v101_v38  ;;  %v998_v60 = vor.u32 %v1072_v59, %v997_v58 }
  0x14   :  { %128 = vmatpush.bf16.msra.mxu0 %v977_v15  ;;  %vm103_vm3 = vmand %vm1292_vm1, %vm1297_vm2  ;;  %v396_v7 = vsel %vm117_vm0, %v386_v3, 0.0  ;;  %v385_v15 = vmul.f32 %v1273_v17, %v1273_v17  ;;  %vm794_vm1 = vcmask 27648  }
  0x16   :  { %991 = vmatmul.msk.bf16.vlgmr.msra.gmra.mxu1 %vm117_vm0, %v134_v14  ;;  %v267_v14 = vsel %vm200_vm4, %v266_v11, 0.0 }
  0x17   :  { %982 = vmatmul.msk.bf16.vlgmr.msra.gmra.mxu0 %vm117_vm0, %v104_v16  ;;  %v393_v16 = vsel %vm117_vm0, %v385_v15, 0.0 }
  0x18   :  { %259 = vmatpush.bf16.msrb.mxu0 %v1002_v53 }
  0x1c   :  { %260 = vmatpush.bf16.msrb.mxu0 %v998_v60 }
  0x26   :  { %992 = vmatmul.msk.bf16.gmra.mxu1 %vm117_vm0, %v135_v19  ;;  %v1026_v19 = vld [vmem:[%s1612_s2 + $0x50] sm:$0xf] }
  0x93   :  { %v163_v20 = vpop.f32.mrf.mxu1 }
  0x94   :  { %v130_v21 = vpop.f32.mrf.mxu0 }
  0x95   :  { %v173_v30 = vpack.c.bf16 %v130_v21, %v130_v21 }
  0x9b   :  { %v165_v22 = vpop.f32.mrf.mxu1 }
  0x9c   :  { %v132_v23 = vpop.f32.mrf.mxu0  ;;  %v174_v28 = vpack.c.bf16 %v165_v22, %v163_v20  ;;  %v1077_v20 = vld [vmem:[%s1612_s2 + $0x6c] sm:$0xf0] }
  0x9d   :  { %v1027_v21 = vor.u32 %v1077_v20, %v1026_v19  ;;  %v1022_v23 = vld [vmem:[%s1612_s2 + $0x10] sm:$0xf] }
  0x9e   :  { %v180_v29 = vsel %vm117_vm0, %v174_v28, 0 }
  0x9f   :  { %465 = vmatpush.bf16.msrb.mxu1 %v1027_v21 }
  0xa3   :  { %v168_v24 = vpop.f32.mrf.mxu1 }
  0xab   :  { %v170_v25 = vpop.f32.mrf.mxu1 }
  0xac   :  { %v175_v26 = vpack.c.bf16 %v170_v25, %v168_v24  ;;  %v1076_v24 = vld [vmem:[%s1612_s2 + $0x2c] sm:$0xf0] }
  0xad   :  { %v1023_v25 = vor.u32 %v1076_v24, %v1022_v23 }
  0xae   :  { %217 = vrot.lane.b32.xlu1 %v175_v26, %s1197_s17  ;;  %v183_v27 = vsel %vm117_vm0, %v175_v26, 0  ;;  %v1011_v26 = vld [vmem:[%s1612_s2 + $0x4c] sm:$0xf] }
  0xaf   :  { %191 = vmatpush.bf16.xpose.msra.mxu2 %v183_v27  ;;  %466 = vmatpush.bf16.msrb.mxu1 %v1023_v25  ;;  %v1075_v27 = vld [vmem:[%s1612_s2 + $0x68] sm:$0xf0] }
  0xb6   :  { %215 = vrot.lane.b32.xlu1 %v174_v28, %s1197_s17  ;;  %v1012_v28 = vor.u32 %v1075_v27, %v1011_v26 }
  0xb7   :  { %192 = vmatpush.bf16.xpose.msra.mxu2 %v180_v29 }
  0xbe   :  { %993 = vmatmul.msk.bf16.vlgmr.msra.gmra.mxu2 %vm117_vm0, %v173_v30  ;;  %v1007_v30 = vld [vmem:[%s1612_s2 + $0xc] sm:$0xf] }
  0xbf   :  { %338 = vmatpush.bf16.msrb.mxu2 %v1012_v28 }
  0xe0   :  { %391 = vadd.xlane.f32.xlu1 %v390_v4 }
 0x120   :  { %v218_v31 = vpop.permute.xlu1 %217 }
 0x121   :  { %230 = vmatpush.bf16.msra.mxu3 %v218_v31  ;;  %v1074_v31 = vld [vmem:[%s1612_s2 + $0x28] sm:$0xf0] }
 0x128   :  { %v216_v32 = vpop.permute.xlu1 %215 }
 0x129   :  { %231 = vmatpush.bf16.msra.mxu3 %v216_v32  ;;  %v1008_v32 = vor.u32 %v1074_v31, %v1007_v30 }
 0x12b   :  { %339 = vmatpush.bf16.msrb.mxu2 %v1008_v32 }
 0x141   :  { %v194_v41 = vpop.f32.mrf.mxu2 }
 0x142   :  { %v198_v42 = vmul.f32 0.17677669, %v194_v41 }
 0x144   :  { %v199_v43 = vsel %vm103_vm3, %v198_v42, -1e+30 }
 0x145   :  { %v201_v44 = vsel %vm200_vm4, %v199_v43, -inf }
 0x146   :  { %202 = vmax.xlane.f32.xlu0 %v201_v44  ;;  %v1084_v44 = vld [vmem:[#allocation4 + $0x4] sm:$0xf0] }
 0x149   :  { %v196_v45 = vpop.f32.mrf.mxu2 }
 0x153   :  { %v392_v35 = vpop.xlane.xlu1 %391 }
 0x154   :  { %v1375_v42 = vadd.f32 1e-12, %v392_v35 }
 0x1b9   :  { %v203_v46 = vpop.xlane.xlu0 %202 }
 0x1ba   :  { %v204_v47 = vsub.f32 %v199_v43, %v203_v46  ;;  %v1016_v43 = vld [vmem:[#allocation4] sm:$0xf] }
 0x1bb   :  { %v1017_v45 = vor.u32 %v1084_v44, %v1016_v43 }
 0x1bc   :  { %v205_v48 = vmul.f32 1.442695, %v204_v47 }
 0x1bd   :  { %372 = vmatpush.bf16.msra.mxu0 %v1017_v45 }
 0x1be   :  { %1095 = vpow2.f32 %v205_v48 }
 0x1c4   :  { %v1096_v49 = vpop.eup %1095 }
 0x1c5   :  { %v207_v50 = vsel %vm200_vm4, %v1096_v49, 0.0 }
 0x1c6   :  { %208 = vadd.xlane.f32.xlu0 %v207_v50 }
 0x1ce   :  { %388 = vadd.xlane.f32.xlu0 %v387_v1 }
 0x1d6   :  { %397 = vadd.xlane.f32.xlu0 %v396_v7 }
 0x239   :  { %v209_v54 = vpop.xlane.xlu0 %208 }
 0x23a   :  { %1097 = vrcp.f32 %v209_v54 }
 0x240   :  { %v1098_v55 = vpop.eup %1097 }
 0x241   :  { %v211_v56 = vmul.f32 %v1098_v55, %v1096_v49  ;;  %v389_v22 = vpop.xlane.xlu0 %388 }
 0x242   :  { %v1372_v41 = vadd.f32 1e-12, %v389_v22  ;;  %v1031_v22 = vld [vmem:[%s1612_s2 + $0x14] sm:$0xf] }
 0x243   :  { %v212_v57 = vpack.c.bf16 %v211_v56, %v211_v56 }
 0x244   :  { %vm409_vm12 = vweird.f32 %v1372_v41 }
 0x245   :  { %994 = vmatmul.msk.bf16.vlgmr.msra.gmra.mxu3 %vm117_vm0, %v212_v57 }
 0x249   :  { %v398_v29 = vpop.xlane.xlu0 %397 }
 0x24a   :  { %v1370_v33 = vadd.f32 1e-12, %v398_v29 }
 0x24c   :  { %1099 = vrsqrt.f32 %v1370_v33  ;;  %vm439_vm9 = vweird.f32 %v1370_v33 }
 0x252   :  { %v1379_v46 = vpop.eup %1099 }
 0x253   :  { %v434_v54 = vmul.f32 %v1379_v46, %v1370_v33  ;;  %vm440_vm11 = vweird.f32 %v1379_v46 }
 0x254   :  { %vm1428_vm15 = vmor %vm439_vm9, %vm440_vm11 }
 0x255   :  { %v435_v59 = vmul.f32 %v1379_v46, %v434_v54 }
 0x257   :  { %v436_v7 = vmul.f32 0.5, %v435_v59 }
 0x259   :  { %v437_v21 = vsub.f32 1.5, %v436_v7 }
 0x25b   :  { %v438_v30 = vmul.f32 %v1379_v46, %v437_v21 }
 0x2c8   :  { %v233_v61 = vpop.f32.mrf.mxu3 }
 0x2c9   :  { %v237_v62 = vpack.c.bf16 %v233_v61, %v233_v61 }
 0x2cb   :  { %1003 = vmatmul.msk.bf16.vlgmr.msrb.gmra.mxu0 %vm117_vm0, %v237_v62 }
 0x2d0   :  { %v235_v63 = vpop.f32.mrf.mxu3 }
 0x348   :  { %v1335_v8 = vpop.f32.mrf.mxu0 }
 0x349   :  { %v282_v9 = vmul.f32 %v1335_v8, %v1335_v8 }
 0x34b   :  { %v283_v10 = vsel %vm200_vm4, %v282_v9, 0.0  ;;  %v1035_v9 = vld [vmem:[%s1612_s2 + $0x54] sm:$0xf] }
 0x34c   :  { %284 = vadd.xlane.f32.xlu2 %v283_v10  ;;  %v1079_v10 = vld [vmem:[%s1612_s2 + $0x70] sm:$0xf0] }
 0x34d   :  { %v1036_v19 = vor.u32 %v1079_v10, %v1035_v9 }
 0x350   :  { %v264_v12 = vpop.f32.mrf.mxu0 }
 0x354   :  { %268 = vadd.xlane.f32.xlu2 %v267_v14 }
 0x35c   :  { %394 = vadd.xlane.f32.xlu2 %v393_v16 }
 0x3bf   :  { %v285_v37 = vpop.xlane.xlu2 %284 }
 0x3c0   :  { %v286_v38 = vadd.f32 1e-12, %v285_v37 }
 0x3c2   :  { %1101 = vrsqrt.f32 %v286_v38  ;;  %vm293_vm6 = vweird.f32 %v286_v38 }
 0x3c3   :  { %1103 = vrsqrt.f32 %v1372_v41 }
 0x3c4   :  { %1105 = vrsqrt.f32 %v1375_v42 }
 0x3c7   :  { %v269_v47 = vpop.xlane.xlu2 %268 }
 0x3c8   :  { %v1102_v48 = vpop.eup %1101  ;;  %v270_v49 = vadd.f32 1e-12, %v269_v47 }
 0x3c9   :  { %v288_v50 = vmul.f32 %v1102_v48, %v286_v38  ;;  %v1381_v51 = vpop.eup %1103  ;;  %vm294_vm5 = vweird.f32 %v1102_v48 }
 0x3ca   :  { %1107 = vrsqrt.f32 %v270_v49  ;;  %v1383_v52 = vpop.eup %1105  ;;  %v404_v56 = vmul.f32 %v1381_v51, %v1372_v41  ;;  %vm295_vm7 = vmor %vm293_vm6, %vm294_vm5  ;;  %vm277_vm10 = vweird.f32 %v270_v49  ;;  %vm410_vm13 = vweird.f32 %v1381_v51 }
 0x3cb   :  { %v289_v53 = vmul.f32 %v1102_v48, %v288_v50  ;;  %v414_v57 = vmul.f32 %v1383_v52, %v1375_v42  ;;  %vm419_vm5 = vweird.f32 %v1375_v42  ;;  %vm420_vm6 = vweird.f32 %v1383_v52 }
 0x3cc   :  { %v405_v1 = vmul.f32 %v1381_v51, %v404_v56  ;;  %v442_v42 = vsel %vm1428_vm15, %v1379_v46, %v438_v30  ;;  %vm421_vm9 = vmor %vm419_vm5, %vm420_vm6  ;;  %vm960_vm15 = vcmask 31744   ;;  %vm962_vm5 = vcmask 64512  }
 0x3cd   :  { %v290_v55 = vmul.f32 0.5, %v289_v53  ;;  %v415_v2 = vmul.f32 %v1383_v52, %v414_v57  ;;  %vm964_vm6 = vcmask 72704  }
 0x3ce   :  { %v406_v14 = vmul.f32 0.5, %v405_v1 }
 0x3cf   :  { %v291_v58 = vsub.f32 1.5, %v290_v55  ;;  %v395_v60 = vpop.xlane.xlu2 %394  ;;  %v416_v15 = vmul.f32 0.5, %v415_v2 }
 0x3d0   :  { %v1108_v61 = vpop.eup %1107  ;;  %v401_v62 = vadd.f32 1e-12, %v395_v60  ;;  %v407_v27 = vsub.f32 1.5, %v406_v14 }
 0x3d1   :  { %v292_v63 = vmul.f32 %v1102_v48, %v291_v58  ;;  %v272_v0 = vmul.f32 %v1108_v61, %v270_v49  ;;  %vm278_vm8 = vweird.f32 %v1108_v61  ;;  %v417_v32 = vsub.f32 1.5, %v416_v15  ;;  %v1461_v58 = vld [vmem:[#allocation4 + $0x10] sm:$0x1] }
 0x3d2   :  { %1109 = vrsqrt.f32 %v401_v62  ;;  %vm279_vm14 = vmor %vm277_vm10, %vm278_vm8  ;;  %v408_v44 = vmul.f32 %v1381_v51, %v407_v27 }
 0x3d3   :  { %v296_v3 = vsel %vm295_vm7, %v1102_v48, %v292_v63  ;;  %v273_v4 = vmul.f32 %v1108_v61, %v272_v0  ;;  %vm429_vm7 = vweird.f32 %v401_v62  ;;  %vm1438_vm10 = vmor %vm409_vm12, %vm410_vm13  ;;  %v418_v47 = vmul.f32 %v1383_v52, %v417_v32  ;;  %v667_v32 = vld.sshfl [vmem:[#allocation1] sm:$0xff pattern:$0x75316420] }
 0x3d4   :  { %v1401_v11 = vmul.f32 %v296_v3, %v1335_v8  ;;  %v1078_v8 = vld [vmem:[%s1612_s2 + $0x30] sm:$0xf0]  ;;  %v446_v48 = vmul.f32 %v442_v42, %v1275_v18  ;;  %v412_v50 = vsel %vm1438_vm10, %v1381_v51, %v408_v44  ;;  %v87_v51 = vunpack.c.l.bf16 %v1461_v58  ;;  %690 = vst [vmem:[#allocation1] ss:$2 sm:$0xff] %v1264_v13  ;;  %v89_v44 = vld [vmem:[%s1610_s0 + $0x4] sm:$0xf] }
 0x3d5   :  { %v274_v12 = vmul.f32 0.5, %v273_v4  ;;  %v1032_v28 = vor.u32 %v1078_v8, %v1031_v22  ;;  %v422_v53 = vsel %vm421_vm9, %v1383_v52, %v418_v47  ;;  %v443_v55 = vmul.f32 %v412_v50, %v1245_v5  ;;  %v1056_v22 = vld [vmem:[%s1612_s2 + $0x58] sm:$0xf] }
 0x3d6   :  { %v1405_v16 = vpack.c.bf16 %v1401_v11, %v1401_v11  ;;  %v444_v56 = vmul.f32 %v422_v53, %v1247_v6  ;;  %vm361_vm12 = vcmask 130048   ;;  %v1081_v8 = vld [vmem:[%s1612_s2 + $0x74] sm:$0xf0] }
 0x3d7   :  { %v275_v20 = vsub.f32 1.5, %v274_v12 }
 0x3d8   :  { %v1110_v23 = vpop.eup %1109  ;;  %1028 = vmatmul.msk.bf16.vlgmr.msrb.gmra.mxu1 %vm117_vm0, %v1405_v16  ;;  %v304_v24 = vsel %vm117_vm0, %v1405_v16, 0  ;;  %v472_v57 = vpack.c.bf16 %v444_v56, %v443_v55  ;;  %v1047_v56 = vld [vmem:[%s1612_s2 + $0x5c] sm:$0xf] }
 0x3d9   :  { %v276_v25 = vmul.f32 %v1108_v61, %v275_v20  ;;  %v424_v26 = vmul.f32 %v1110_v23, %v401_v62  ;;  %313 = vmatpush.bf16.xpose.msrb.mxu3 %v304_v24  ;;  %vm430_vm8 = vweird.f32 %v1110_v23  ;;  %v1057_v24 = vor.u32 %v1081_v8, %v1056_v22 }
 0x3da   :  { %vm431_vm11 = vmor %vm429_vm7, %vm430_vm8 }
 0x3db   :  { %v280_v29 = vsel %vm279_vm14, %v1108_v61, %v276_v25  ;;  %v425_v31 = vmul.f32 %v1110_v23, %v424_v26  ;;  %v1052_v25 = vld [vmem:[%s1612_s2 + $0x18] sm:$0xf]  ;;  %vm791_vm14 = vcmp.eq.s32.totalorder %v1285_v34, %v1288_v36 }
 0x3dc   :  { %v1424_v35 = vmul.f32 %v280_v29, %v1264_v13  ;;  %v1080_v26 = vld [vmem:[%s1612_s2 + $0x34] sm:$0xf0] }
 0x3dd   :  { %v426_v38 = vmul.f32 0.5, %v425_v31 }
 0x3de   :  { %v298_v33 = vpack.c.bf16 %v1424_v35, %v1424_v35 }
 0x3df   :  { %v427_v45 = vsub.f32 1.5, %v426_v38  ;;  %v1489_v38 = vld.sshfl [vmem:[#allocation1] sm:$0xff pattern:$0x75316420] }
 0x3e0   :  { %1004 = vmatmul.msk.bf16.vlgmr.msrb.gmra.mxu3 %vm117_vm0, %v298_v33  ;;  %1013 = vmatmul.msk.bf16.vlgmr.msrb.gmra.mxu2 %vm117_vm0, %v298_v33  ;;  %711 = vst [vmem:[#allocation1] ss:$2 sm:$0xff] %v1264_v13 }
 0x3e1   :  { %498 = vmatpush.bf16.msra.mxu3 %v1036_v19  ;;  %v428_v41 = vmul.f32 %v1110_v23, %v427_v45 }
 0x3e3   :  { %v432_v49 = vsel %vm431_vm11, %v1110_v23, %v428_v41 }
 0x3e4   :  { %v445_v46 = vmul.f32 %v432_v49, %v1273_v17  ;;  %v319_v17 = vperm.slane %v87_v51, 0 }
 0x3e5   :  { %499 = vmatpush.bf16.msra.mxu3 %v1032_v28  ;;  %v1053_v28 = vor.u32 %v1080_v26, %v1052_v25 }
 0x3e6   :  { %v473_v54 = vpack.c.bf16 %v446_v48, %v445_v46 }
 0x3e7   :  { %v1501_v45 = vld.sshfl [vmem:[#allocation1] sm:$0xff pattern:$0x75316420] }
 0x3e8   :  { %559 = vmatpush.bf16.msrb.mxu0 %v473_v54  ;;  %720 = vst [vmem:[#allocation1] ss:$2 sm:$0xff] %v89_v44 }
 0x3ec   :  { %560 = vmatpush.bf16.msrb.mxu0 %v472_v57 }
 0x3f0   :  { %1037 = vmatmul.msk.bf16.vlgmr.msra.gmra.mxu3 %vm117_vm0, %v472_v57  ;;  %v1083_v57 = vld [vmem:[%s1612_s2 + $0x78] sm:$0xf0] }
 0x400   :  { %1038 = vmatmul.msk.bf16.gmra.mxu3 %vm117_vm0, %v473_v54 }
 0x455   :  { %v468_v18 = vpop.f32.mrf.mxu1 }
 0x456   :  { %v511_v29 = vpack.c.bf16 %v468_v18, %v468_v18  ;;  %v1048_v18 = vor.u32 %v1083_v57, %v1047_v56 }
 0x458   :  { %588 = vmatpush.bf16.msra.mxu1 %v1048_v18 }
 0x45d   :  { %v470_v52 = vpop.f32.mrf.mxu1 }
 0x463   :  { %v1466_v59 = vpop.f32.mrf.mxu3  ;;  %v341_v5 = vpop.f32.mrf.mxu2 }
 0x464   :  { %v342_v6 = vadd.f32 %v341_v5, %v319_v17 }
 0x466   :  { %v345_v60 = vmul.f32 %v342_v6, %v342_v6 }
 0x468   :  { %v346_v61 = vmul.f32 %v345_v60, %v342_v6  ;;  %v1043_v60 = vld [vmem:[%s1612_s2 + $0x1c] sm:$0xf] }
 0x46a   :  { %v347_v62 = vmul.f32 0.044715, %v346_v61  ;;  %v1082_v61 = vld [vmem:[%s1612_s2 + $0x38] sm:$0xf0]  ;;  %s1201_s2 = smov 4  }
 0x46b   :  { %v317_v63 = vpop.f32.mrf.mxu3  ;;  %v343_v0 = vpop.f32.mrf.mxu2 }
 0x46c   :  { %v348_v1 = vadd.f32 %v347_v62, %v342_v6  ;;  %v1044_v62 = vor.u32 %v1082_v61, %v1043_v60 }
 0x46e   :  { %v349_v2 = vmul.f32 0.7978846, %v348_v1  ;;  %589 = vmatpush.bf16.msra.mxu1 %v1044_v62 }
 0x470   :  { %1111 = vtanh.f32 %v349_v2  ;;  %v1061_v2 = vld [vmem:[#allocation4 + $0x4] sm:$0xf] }
 0x473   :  { %v501_v3 = vpop.f32.mrf.mxu3 }
 0x476   :  { %v1112_v4 = vpop.eup %1111 }
 0x477   :  { %v351_v7 = vadd.f32 1.0, %v1112_v4 }
 0x479   :  { %v352_v9 = vmul.f32 0.5, %v351_v7  ;;  %v721_v7 = vld.sshfl [vmem:[#allocation1] sm:$0xff pattern:$0x75316420] }
 0x47a   :  { %722 = vrot.lane.b32.xlu1 %v721_v7, %s1199_s13 }
 0x47b   :  { %v353_v10 = vmul.f32 %v352_v9, %v342_v6  ;;  %v503_v12 = vpop.f32.mrf.mxu3  ;;  %v620_v9 = vperm.slane %v87_v51, 1 }
 0x47c   :  { %v512_v23 = vpack.c.bf16 %v503_v12, %v501_v3  ;;  %v1085_v3 = vld [vmem:[#allocation4 + $0x8] sm:$0xf0] }
 0x47d   :  { %v354_v14 = vpack.c.bf16 %v353_v10, %v353_v10  ;;  %v1062_v4 = vor.u32 %v1085_v3, %v1061_v2 }
 0x47e   :  { %v518_v27 = vsel %vm117_vm0, %v512_v23, 0 }
 0x47f   :  { %1018 = vmatmul.msk.bf16.vlgmr.msra.gmra.mxu0 %vm361_vm12, %v354_v14 }
 0x480   :  { %648 = vmatpush.bf16.msra.mxu0 %v1062_v4 }
 0x483   :  { %v506_v15 = vpop.f32.mrf.mxu3 }
 0x48b   :  { %v508_v19 = vpop.f32.mrf.mxu3 }
 0x48c   :  { %v513_v20 = vpack.c.bf16 %v508_v19, %v506_v15 }
 0x48e   :  { %v521_v21 = vsel %vm117_vm0, %v513_v20, 0 }
 0x48f   :  { %529 = vmatpush.bf16.xpose.msra.mxu2 %v521_v21 }
 0x497   :  { %530 = vmatpush.bf16.xpose.msra.mxu2 %v518_v27 }
 0x49e   :  { %1039 = vmatmul.msk.bf16.vlgmr.msra.gmra.mxu2 %vm117_vm0, %v511_v29 }
 0x49f   :  { %613 = vmatpush.bf16.msrb.mxu2 %v1057_v24 }
 0x4a3   :  { %614 = vmatpush.bf16.msrb.mxu2 %v1053_v28 }
 0x4ae   :  { %1058 = vmatmul.msk.bf16.vlgmr.msrb.gmra.mxu2 %vm117_vm0, %v1405_v16 }
 0x4fc   :  { %v1486_v30 = vpop.f32.mrf.mxu0 }
 0x4fd   :  { %v1019_v41 = vclamps-f32 %v1486_v30, 8.0 }
 0x4ff   :  { %v381_v39 = vmul.f32 1.442695, %v1019_v41 }
 0x501   :  { %1113 = vpow2.f32 %v381_v39 }
 0x504   :  { %v376_v31 = vpop.f32.mrf.mxu0 }
 0x507   :  { %v1506_v48 = vpop.eup %1113 }
 0x508   :  { %v659_v49 = vmul.f32 %v1506_v48, %v1264_v13 }
 0x521   :  { %v532_v37 = vpop.f32.mrf.mxu2 }
 0x522   :  { %v536_v43 = vmul.f32 0.17677669, %v532_v37 }
 0x524   :  { %v537_v33 = vsel %vm103_vm3, %v536_v43, -1e+30 }
 0x525   :  { %v538_v16 = vsel %vm200_vm4, %v537_v33, -inf }
 0x526   :  { %539 = vmax.xlane.f32.xlu2 %v538_v16 }
 0x529   :  { %v534_v42 = vpop.f32.mrf.mxu2 }
 0x531   :  { %v616_v47 = vpop.f32.mrf.mxu2 }
 0x539   :  { %v618_v40 = vpop.f32.mrf.mxu2 }
 0x53e   :  { %668 = vrot.lane.b32.xlu2 %v667_v32, %s1198_s5 }
 0x546   :  { %661 = vrot.lane.b32.xlu2 %v659_v49, %s1197_s17  ;;  %v378_v49 = vadd.f32 %v1486_v30, %v1424_v35 }
 0x548   :  { %v678_v62 = vmul.f32 2.0, %v378_v49  ;;  %v677_v2 = vmul.f32 %v378_v49, %v378_v49 }
 0x599   :  { %v540_v50 = vpop.xlane.xlu2 %539 }
 0x59a   :  { %v541_v53 = vsub.f32 %v537_v33, %v540_v50  ;;  %v723_v33 = vpop.permute.xlu1 %722 }
 0x59c   :  { %v542_v46 = vmul.f32 1.442695, %v541_v53 }
 0x59e   :  { %1115 = vpow2.f32 %v542_v46 }
 0x5a1   :  { %v669_v32 = vpop.permute.xlu2 %668 }
 0x5a4   :  { %v1116_v54 = vpop.eup %1115 }
 0x5a5   :  { %v544_v55 = vsel %vm200_vm4, %v1116_v54, 0.0 }
 0x5a6   :  { %545 = vadd.xlane.f32.xlu0 %v544_v55 }
 0x5a9   :  { %v662_v39 = vpop.permute.xlu2 %661 }
 0x619   :  { %v546_v52 = vpop.xlane.xlu0 %545 }
 0x61a   :  { %1117 = vrcp.f32 %v546_v52 }
 0x620   :  { %v1118_v17 = vpop.eup %1117 }
 0x621   :  { %v548_v5 = vmul.f32 %v1118_v17, %v1116_v54 }
 0x623   :  { %v549_v6 = vpack.c.bf16 %v548_v5, %v548_v5 }
 0x625   :  { %1040 = vmatmul.msk.bf16.vlgmr.msrb.gmra.mxu0 %vm117_vm0, %v549_v6 }
 0x6a2   :  { %v562_v63 = vpop.f32.mrf.mxu0 }
 0x6a3   :  { %v566_v0 = vpack.c.bf16 %v562_v63, %v562_v63 }
 0x6a5   :  { %1049 = vmatmul.msk.bf16.vlgmr.msra.gmra.mxu1 %vm117_vm0, %v566_v0 }
 0x6aa   :  { %v564_v1 = vpop.f32.mrf.mxu0 }
 0x722   :  { %v591_v10 = vpop.f32.mrf.mxu1 }
 0x723   :  { %v617_v12 = vadd.f32 %v616_v47, %v591_v10 }
 0x725   :  { %v621_v14 = vadd.f32 %v620_v9, %v617_v12 }
 0x727   :  { %v622_v15 = vmul.f32 %v621_v14, %v621_v14 }
 0x729   :  { %v623_v19 = vmul.f32 %v622_v15, %v621_v14 }
 0x72a   :  { %v593_v20 = vpop.f32.mrf.mxu1 }
 0x72b   :  { %v624_v21 = vmul.f32 0.044715, %v623_v19 }
 0x72d   :  { %v625_v22 = vadd.f32 %v624_v21, %v621_v14 }
 0x72f   :  { %v626_v8 = vmul.f32 0.7978846, %v625_v22 }
 0x731   :  { %1119 = vtanh.f32 %v626_v8 }
 0x737   :  { %v1120_v23 = vpop.eup %1119 }
 0x738   :  { %v628_v24 = vadd.f32 1.0, %v1120_v23 }
 0x73a   :  { %v629_v25 = vmul.f32 0.5, %v628_v24 }
 0x73c   :  { %v630_v26 = vmul.f32 %v629_v25, %v621_v14 }
 0x73e   :  { %v631_v27 = vpack.c.bf16 %v630_v26, %v630_v26 }
 0x740   :  { %1063 = vmatmul.msk.bf16.vlgmr.msra.gmra.mxu0 %vm361_vm12, %v631_v27 }
 0x7bd   :  { %v1530_v58 = vpop.f32.mrf.mxu0 }
 0x7be   :  { %v1064_v51 = vclamps-f32 %v1530_v58, 8.0  ;;  %v654_v44 = vadd.f32 %v1530_v58, %v1401_v11 }
 0x7c0   :  { %v657_v28 = vmul.f32 1.442695, %v1064_v51  ;;  %v705_v11 = vmul.f32 2.0, %v654_v44  ;;  %v704_v57 = vmul.f32 %v654_v44, %v654_v44  ;;  %v912_v6 = vsub.f32 %v654_v44, %v378_v49 }
 0x7c2   :  { %1121 = vpow2.f32 %v657_v28  ;;  %v913_v60 = vmul.f32 %v912_v6, %v912_v6 }
 0x7c5   :  { %v652_v29 = vpop.f32.mrf.mxu0 }
 0x7c8   :  { %v1122_v31 = vpop.eup %1121 }
 0x7c9   :  { %707 = vrot.lane.b32.xlu2 %v1122_v31, %s1197_s17  ;;  %v671_v37 = vmul.f32 %v1122_v31, %v669_v32  ;;  %v1536_v43 = vmul.f32 %v1122_v31, %v1122_v31 }
 0x7cb   :  { %673 = vrot.lane.b32.xlu0 %v671_v37, %s1197_s17  ;;  %v725_v16 = vmul.f32 %v723_v33, %v1536_v43 }
 0x7d1   :  { %727 = vrot.lane.b32.xlu2 %v725_v16, %s1197_s17 }
 0x7d3   :  { %692 = vrot.lane.b32.xlu0 %v1489_v38, %s1197_s17 }
 0x7d9   :  { %684 = vrot.lane.b32.xlu2 %v1264_v13, %s1197_s17  ;;  %v664_v13 = vadd.f32 %v662_v39, %v378_v49 }
 0x7db   :  { %713 = vrot.lane.b32.xlu0 %v1501_v45, %s1199_s13  ;;  %v689_v45 = vmul.f32 %v1506_v48, %v1506_v48  ;;  %v768_v54 = vpack.c.bf16 %v664_v13, %v664_v13 }
 0x7dd   :  { %v919_v22 = vmul.f32 2.0, %v689_v45 }
 0x7df   :  { %1123 = vrcp.f32 %v919_v22  ;;  %vm925_vm2 = vweird.f32 %v919_v22 }
 0x7e3   :  { %680 = vrot.lane.b32.xlu0 %v1506_v48, %s1197_s17  ;;  %v795_v48 = vsel %vm794_vm1, %v1466_v59, -inf }
 0x7e4   :  { %v808_v15 = vrot.slane %v795_v48, 4 }
 0x7e5   :  { %v1124_v33 = vpop.eup %1123 }
 0x7e6   :  { %v809_v19 = vmax.f32 %v795_v48, %v808_v15 }
 0x7e8   :  { %v810_v20 = vrot.slane %v809_v19, 2 }
 0x7ea   :  { %v811_v24 = vmax.f32 %v809_v19, %v810_v20 }
 0x7ec   :  { %v812_v31 = vrot.slane %v811_v24, 1 }
 0x7ee   :  { %v813_v16 = vmax.f32 %v811_v24, %v812_v31 }
 0x823   :  { %v708_v46 = vpop.permute.xlu2 %707 }
 0x824   :  { %v710_v55 = vmul.f32 %v708_v46, %v705_v11  ;;  %v929_v46 = vand.u32 2147483647, %v919_v22 }
 0x826   :  { %vm930_vm13 = vcmp.eq.f32.partialorder %v929_v46, 8.507059e+37 }
 0x82b   :  { %v728_v52 = vpop.permute.xlu2 %727 }
 0x833   :  { %v685_v0 = vpop.permute.xlu2 %684 }
 0x83d   :  { %v674_v42 = vpop.permute.xlu0 %673 }
 0x83e   :  { %v676_v47 = vadd.f32 %v674_v42, %v654_v44  ;;  %v921_v42 = vmul.f32 %v1124_v33, %v919_v22 }
 0x840   :  { %v769_v40 = vpack.c.bf16 %v676_v47, %v676_v47  ;;  %v814_v47 = vsub.f32 %v1466_v59, %v813_v16 }
 0x842   :  { %v774_v38 = vsel %vm117_vm0, %v769_v40, 0  ;;  %v922_v40 = vsub.f32 1.0, %v921_v42  ;;  %v815_v49 = vmul.f32 1.442695, %v814_v47 }
 0x843   :  { %783 = vmatpush.bf16.xpose.msrb.mxu1 %v774_v38 }
 0x844   :  { %v923_v13 = vmul.f32 %v1124_v33, %v922_v40 }
 0x845   :  { %v693_v50 = vpop.permute.xlu0 %692 }
 0x846   :  { %v695_v53 = vmul.f32 %v693_v50, %v689_v45  ;;  %v924_v45 = vadd.f32 %v1124_v33, %v923_v13  ;;  %v931_v50 = vand.u32 2147483648, %v919_v22 }
 0x848   :  { %697 = vrot.lane.b32.xlu1 %v695_v53, %s1197_s17 }
 0x84a   :  { %1065 = vmatmul.msk.bf16.vlgmr.msrb.gmra.mxu1 %vm117_vm0, %v768_v54  ;;  %vm926_vm0 = vweird.f32 %v1124_v33 }
 0x84b   :  { %vm927_vm3 = vmor %vm925_vm2, %vm926_vm0 }
 0x84c   :  { %v928_v11 = vsel %vm927_vm3, %v1124_v33, %v924_v45 }
 0x84d   :  { %v714_v56 = vpop.permute.xlu0 %713 }
 0x84e   :  { %v716_v35 = vmul.f32 %v714_v56, %v710_v55  ;;  %v932_v56 = vor.u32 1.1754944e-38, %v931_v50 }
 0x850   :  { %v717_v18 = vadd.f32 %v716_v35, %v704_v57  ;;  %v933_v35 = vsel %vm930_vm13, %v932_v56, %v928_v11 }
 0x852   :  { %v730_v17 = vadd.f32 %v728_v52, %v717_v18 }
 0x854   :  { %v731_v5 = vsel %vm200_vm4, %v730_v17, 0.0  ;;  %v911_v17 = vsub.f32 %v1019_v41, %v1064_v51  ;;  %v1200_v41 = vmov 0.0  }
 0x855   :  { %732 = vadd.xlane.f32.xlu0 %v731_v5  ;;  %v681_v61 = vpop.permute.xlu0 %680  ;;  %v1066_v58 = vsel %vm791_vm14, 1.0, %v1200_v41 }
 0x856   :  { %v683_v63 = vmul.f32 %v681_v61, %v678_v62 }
 0x858   :  { %v687_v1 = vmul.f32 %v685_v0, %v683_v63 }
 0x85a   :  { %v688_v3 = vadd.f32 %v687_v1, %v677_v2 }
 0x85d   :  { %796 = vmax.xlane.f32.xlu0 %v795_v48 }
 0x871   :  { %915 = vrot.lane.b32.xlu0 %v913_v60, %s1199_s13 }
 0x8ba   :  { %v698_v4 = vpop.permute.xlu1 %697 }
 0x8bb   :  { %v700_v7 = vadd.f32 %v698_v4, %v688_v3 }
 0x8bd   :  { %v701_v9 = vsel %vm200_vm4, %v700_v7, 0.0 }
 0x8be   :  { %702 = vadd.xlane.f32.xlu2 %v701_v9 }
 0x8c7   :  { %v785_v10 = vpop.f32.mrf.mxu1 }
 0x8c8   :  { %v733_v12 = vpop.xlane.xlu0 %732  ;;  %v789_v27 = vmul.f32 2.0, %v785_v10 }
 0x8c9   :  { %734 = vxpose.xlu1.b32.start.end [1/1] (short) (narrow) %v733_v12, 8 }
 0x8cf   :  { %v787_v14 = vpop.f32.mrf.mxu1 }
 0x8d0   :  { %v1563_v21 = vpop.xlane.xlu0 %796 }
 0x8d1   :  { %v798_v8 = vsub.f32 %v1466_v59, %v1563_v21 }
 0x8d3   :  { %v799_v29 = vmul.f32 1.442695, %v798_v8 }
 0x8d5   :  { %1125 = vpow2.f32 %v799_v29 }
 0x8d6   :  { %1127 = vpow2.f32 %v815_v49 }
 0x8db   :  { %v1126_v39 = vpop.eup %1125 }
 0x8dc   :  { %v801_v38 = vsel %vm794_vm1, %v1126_v39, 0.0  ;;  %v1128_v54 = vpop.eup %1127 }
 0x8dd   :  { %v817_v57 = vsel %vm794_vm1, %v1128_v54, 0.0 }
 0x8de   :  { %v818_v52 = vrot.slane %v817_v57, 4 }
 0x8e0   :  { %v819_v48 = vadd.f32 %v818_v52, %v817_v57 }
 0x8e2   :  { %v820_v60 = vrot.slane %v819_v48, 2 }
 0x8e3   :  { %v916_v53 = vpop.permute.xlu0 %915 }
 0x8e4   :  { %v918_v55 = vadd.f32 %v916_v53, %v1536_v43  ;;  %v821_v61 = vadd.f32 %v820_v60, %v819_v48 }
 0x8e6   :  { %v934_v18 = vmul.f32 %v933_v35, %v918_v55  ;;  %v822_v43 = vrot.slane %v821_v61, 1 }
 0x8e8   :  { %v935_v5 = vadd.f32 %v934_v18, %v911_v17  ;;  %v823_v62 = vadd.f32 %v822_v43, %v821_v61 }
 0x8ea   :  { %v1067_v6 = vadd.f32 -0.5, %v935_v5  ;;  %1129 = vlog2.f32 %v823_v62 }
 0x8f0   :  { %v1130_v63 = vpop.eup %1129 }
 0x8f1   :  { %v825_v1 = vmul.f32 0.6931472, %v1130_v63 }
 0x8f3   :  { %v826_v3 = vadd.f32 %v825_v1, %v813_v16 }
 0x8f5   :  { %v827_v30 = vsub.f32 %v1466_v59, %v826_v3 }
 0x8f7   :  { %v840_v7 = vmul.f32 %v1066_v58, %v827_v30 }
 0x8f9   :  { %v841_v10 = vsel %vm794_vm1, %v840_v7, 0.0 }
 0x931   :  { %v703_v26 = vpop.xlane.xlu2 %702 }
 0x96d   :  { %v750_v23 = vpop.trf.xlu1 }
 0x96e   :  { %v766_v25 = vperm.slane %v750_v23, 0 }
 0x970   :  { %v767_v28 = vadd.f32 %v766_v25, %v703_v26 }
 0x972   :  { %v1567_v32 = vsub.f32 %v767_v28, %v789_v27 }
 0x974   :  { %v1570_v37 = vsub.f32 0.0, %v1567_v32 }
 0x976   :  { %v854_v44 = vsel %vm794_vm1, %v1570_v37, -inf }
 0x977   :  { %855 = vmax.xlane.f32.xlu2 %v854_v44  ;;  %v867_v0 = vrot.slane %v854_v44, 4 }
 0x979   :  { %v868_v2 = vmax.f32 %v854_v44, %v867_v0 }
 0x97b   :  { %v869_v4 = vrot.slane %v868_v2, 2 }
 0x97d   :  { %v870_v51 = vmax.f32 %v868_v2, %v869_v4 }
 0x97f   :  { %802 = vadd.xlane.f32.xlu2 %v801_v38  ;;  %v871_v9 = vrot.slane %v870_v51, 1 }
 0x981   :  { %v872_v12 = vmax.f32 %v870_v51, %v871_v9 }
 0x983   :  { %v873_v14 = vsub.f32 %v1570_v37, %v872_v12 }
 0x985   :  { %v874_v15 = vmul.f32 1.442695, %v873_v14 }
 0x987   :  { %1131 = vpow2.f32 %v874_v15 }
 0x98d   :  { %v1132_v19 = vpop.eup %1131 }
 0x98e   :  { %v876_v20 = vsel %vm794_vm1, %v1132_v19, 0.0 }
 0x98f   :  { %v877_v22 = vrot.slane %v876_v20, 4 }
 0x991   :  { %v878_v34 = vadd.f32 %v877_v22, %v876_v20 }
 0x993   :  { %v879_v36 = vrot.slane %v878_v34, 2 }
 0x995   :  { %v880_v8 = vadd.f32 %v879_v36, %v878_v34 }
 0x997   :  { %938 = vrot.lane.b32.xlu2 %v1067_v6, %s1197_s17  ;;  %v881_v23 = vrot.slane %v880_v8, 1 }
 0x999   :  { %v882_v27 = vadd.f32 %v881_v23, %v880_v8 }
 0x9c0   :  { %842 = vadd.xlane.f32.xlu2 %v841_v10 }
 0x9ea   :  { %v856_v24 = vpop.xlane.xlu2 %855 }
 0x9eb   :  { %v857_v25 = vsub.f32 %v1570_v37, %v856_v24 }
 0x9ed   :  { %v858_v26 = vmul.f32 1.442695, %v857_v25 }
 0x9ef   :  { %1133 = vpow2.f32 %v858_v26 }
 0x9f0   :  { %1135 = vlog2.f32 %v882_v27 }
 0x9f2   :  { %v803_v28 = vpop.xlane.xlu2 %802 }
 0x9f3   :  { %1137 = vlog2.f32 %v803_v28 }
 0x9f5   :  { %v1134_v29 = vpop.eup %1133 }
 0x9f6   :  { %v860_v31 = vsel %vm794_vm1, %v1134_v29, 0.0  ;;  %v1136_v33 = vpop.eup %1135 }
 0x9f7   :  { %861 = vadd.xlane.f32.xlu1 %v860_v31  ;;  %v884_v47 = vmul.f32 0.6931472, %v1136_v33 }
 0x9f9   :  { %v1138_v16 = vpop.eup %1137  ;;  %v885_v38 = vadd.f32 %v884_v47, %v872_v12 }
 0x9fa   :  { %v805_v44 = vmul.f32 0.6931472, %v1138_v16  ;;  %v939_v42 = vpop.permute.xlu2 %938 }
 0x9fb   :  { %v941_v39 = vsel %vm200_vm4, %v939_v42, 0.0  ;;  %v886_v50 = vsub.f32 %v1570_v37, %v885_v38  ;;  %vm832_vm4 = vcmask 1043456  }
 0x9fc   :  { %v806_v40 = vadd.f32 %v805_v44, %v1563_v21  ;;  %942 = vadd.xlane.f32.xlu2 %v941_v39 }
 0x9fd   :  { %v898_v53 = vmul.f32 %v1066_v58, %v886_v50 }
 0x9fe   :  { %v807_v49 = vsub.f32 %v1466_v59, %v806_v40 }
 0x9ff   :  { %v899_v46 = vsel %vm794_vm1, %v898_v53, 0.0 }
 0xa00   :  { %v828_v13 = vmul.f32 %v1066_v58, %v807_v49 }
 0xa02   :  { %v829_v45 = vsel %vm794_vm1, %v828_v13, 0.0 }
 0xa03   :  { %830 = vadd.xlane.f32.xlu0 %v829_v45 }
 0xa0b   :  { %900 = vadd.xlane.f32.xlu0 %v899_v46 }
 0xa33   :  { %v843_v52 = vpop.xlane.xlu2 %842 }
 0xa34   :  { %v844_v6 = vsel %vm832_vm4, %v843_v52, 0.0 }
 0xa35   :  { %v845_v43 = vrot.slane %v844_v6, 4 }
 0xa37   :  { %v846_v1 = vadd.f32 %v845_v43, %v844_v6 }
 0xa39   :  { %v847_v4 = vrot.slane %v846_v1, 2 }
 0xa3b   :  { %v848_v9 = vadd.f32 %v847_v4, %v846_v1 }
 0xa3d   :  { %v849_v20 = vrot.slane %v848_v9, 1 }
 0xa6a   :  { %v862_v54 = vpop.xlane.xlu1 %861 }
 0xa6b   :  { %1139 = vlog2.f32 %v862_v54 }
 0xa6f   :  { %v943_v5 = vpop.xlane.xlu2 %942 }
 0xa70   :  { %v944_v61 = vsel %vm832_vm4, %v943_v5, 0.0 }
 0xa71   :  { %v1140_v11 = vpop.eup %1139  ;;  %v945_v62 = vrot.slane %v944_v61, 4 }
 0xa72   :  { %v864_v55 = vmul.f32 0.6931472, %v1140_v11 }
 0xa74   :  { %v865_v56 = vadd.f32 %v864_v55, %v856_v24  ;;  %v850_v24 = vadd.f32 %v849_v20, %v848_v9 }
 0xa76   :  { %v866_v21 = vsub.f32 %v1570_v37, %v865_v56  ;;  %v831_v18 = vpop.xlane.xlu0 %830 }
 0xa77   :  { %v833_v17 = vsel %vm832_vm4, %v831_v18, 0.0 }
 0xa78   :  { %v887_v57 = vmul.f32 %v1066_v58, %v866_v21  ;;  %v834_v60 = vrot.slane %v833_v17, 4 }
 0xa7a   :  { %v888_v35 = vsel %vm794_vm1, %v887_v57, 0.0  ;;  %v835_v63 = vadd.f32 %v834_v60, %v833_v17 }
 0xa7b   :  { %889 = vadd.xlane.f32.xlu0 %v888_v35 }
 0xa7c   :  { %v836_v2 = vrot.slane %v835_v63, 2 }
 0xa7e   :  { %v901_v48 = vpop.xlane.xlu0 %900  ;;  %v837_v41 = vadd.f32 %v836_v2, %v835_v63 }
 0xa7f   :  { %v902_v37 = vsel %vm832_vm4, %v901_v48, 0.0 }
 0xa80   :  { %v903_v0 = vrot.slane %v902_v37, 4  ;;  %v838_v14 = vrot.slane %v837_v41, 1 }
 0xa82   :  { %v904_v3 = vadd.f32 %v903_v0, %v902_v37  ;;  %v839_v36 = vadd.f32 %v838_v14, %v837_v41 }
 0xa84   :  { %v905_v58 = vrot.slane %v904_v3, 2  ;;  %v851_v27 = vadd.f32 %v850_v24, %v839_v36 }
 0xa86   :  { %v906_v15 = vadd.f32 %v905_v58, %v904_v3  ;;  %v852_v16 = vmul.f32 -0.125, %v851_v27 }
 0xa88   :  { %v907_v8 = vrot.slane %v906_v15, 1 }
 0xa8a   :  { %v908_v28 = vadd.f32 %v907_v8, %v906_v15 }
 0xa8f   :  { %957 = vrot.lane.b32.xlu0 %v1567_v32, %s1201_s2  ;;  %v946_v32 = vadd.f32 %v945_v62, %v944_v61 }
 0xa91   :  { %v947_v30 = vrot.slane %v946_v32, 2 }
 0xa93   :  { %v948_v12 = vadd.f32 %v947_v30, %v946_v32 }
 0xa95   :  { %v949_v34 = vrot.slane %v948_v12, 1 }
 0xa97   :  { %v950_v26 = vadd.f32 %v949_v34, %v948_v12 }
 0xa99   :  { %v951_v33 = vmul.f32 0.25, %v950_v26 }
 0xa9b   :  { %v954_v47 = vmul.f32 0.0001, %v951_v33 }
 0xaee   :  { %v890_v51 = vpop.xlane.xlu0 %889 }
 0xaef   :  { %v891_v7 = vsel %vm832_vm4, %v890_v51, 0.0 }
 0xaf0   :  { %v892_v10 = vrot.slane %v891_v7, 4 }
 0xaf2   :  { %v893_v19 = vadd.f32 %v892_v10, %v891_v7 }
 0xaf4   :  { %v894_v22 = vrot.slane %v893_v19, 2 }
 0xaf6   :  { %v895_v23 = vadd.f32 %v894_v22, %v893_v19 }
 0xaf8   :  { %v896_v25 = vrot.slane %v895_v23, 1 }
 0xafa   :  { %v897_v29 = vadd.f32 %v896_v25, %v895_v23 }
 0xafc   :  { %v909_v31 = vadd.f32 %v908_v28, %v897_v29 }
 0xafe   :  { %v910_v44 = vmul.f32 -0.125, %v909_v31 }
 0xb00   :  { %v952_v42 = vadd.f32 %v910_v44, %v852_v16 }
 0xb01   :  { %v958_v40 = vpop.permute.xlu0 %957 }
 0xb02   :  { %v953_v39 = vmul.f32 0.1, %v952_v42  ;;  %v961_v38 = vsel %vm960_vm15, %v1466_v59, %v958_v40 }
 0xb04   :  { %v955_v49 = vadd.f32 %v954_v47, %v953_v39 }
 0xb06   :  { %v963_v13 = vsel %vm962_vm5, %v961_v38, %v955_v49 }
 0xb07   :  { %v965_v45 = vsel %vm964_vm6, %v963_v13, 0.0 }
 0xb08   :  { %v966_v50 = vsel %vm832_vm4, %v965_v45, 0.0 }
 0xb09   :  { %967 = vst [vmem:[%s1614_s4] sm:$0xff] %v966_v50 }
 0xb0a   :  { %972 = vsyncpa [#allocation3], 1 }
 0xb0b   :  { %973 = vsyncpa [#allocation5], 1 }

</bundles_post_ra>
